<compile_context>
chip_gen: v6e
topology: v6e:2x2x1
jax: 0.10.0
libtpu: 0.0.40
codegen_flags: <defaults>
</compile_context>

<pallas_src>
import jax
import jax.numpy as jnp
from jax.experimental import pallas as pl
from jax.experimental.pallas import tpu as pltpu


TILE_B = 512                  # batch rows per grid step (pipelined)
_PALLAS_BATCH_THRESHOLD = 256 # below this, dispatch to the pure-JAX path


def _mlp_kernel(x_ref, w1_ref, b1_ref, w2_ref, b2_ref, w3_ref, b3_ref, o_ref):
    # Layer 0: Linear(32 -> 64) + relu        (MXU matmul, f32 accumulation)
    h1 = jnp.dot(x_ref[...], w1_ref[...], preferred_element_type=jnp.float32)
    h1 = jnp.maximum(h1 + b1_ref[...], 0.0)

    # Layer 1: Linear(64 -> 64) + relu
    h2 = jnp.dot(h1, w2_ref[...], preferred_element_type=jnp.float32)
    h2 = jnp.maximum(h2 + b2_ref[...], 0.0)

    # Layer 2: Linear(64 -> 1) + sigmoid.
    # N=1 matmul would waste the MXU; do it on the VPU/XLU instead:
    # broadcast-multiply by the (1, 64) weight row and reduce over lanes.
    logits = jnp.sum(h2 * w3_ref[...], axis=-1, keepdims=True) + b3_ref[0, 0]
    o_ref[...] = jax.nn.sigmoid(logits).astype(o_ref.dtype)


def model_forward_pallas(x, params, tile_b=TILE_B):
    """Fused, batch-tiled forward pass of the 3-layer MLP built by Model."""
    w1, b1, w2, b2, w3, b3 = params
    batch, in_dim = x.shape
    hidden = w1.shape[1]
    out_dim = w3.shape[1]  # == 1 for the condensed classifier

    # Pad the batch to a multiple of the tile so every grid step is full.
    num_tiles = pl.cdiv(batch, tile_b)
    padded = num_tiles * tile_b
    if padded != batch:
        x = jnp.pad(x, ((0, padded - batch), (0, 0)))

    w3_row = w3.reshape(1, hidden)   # (1, 64) row for the VPU reduce
    b3_s = b3.reshape(1, 1)          # single scalar, lives in SMEM

    out = pl.pallas_call(
        _mlp_kernel,
        out_shape=jax.ShapeDtypeStruct((padded, out_dim), jnp.float32),
        grid=(num_tiles,),
        in_specs=[
            # streamed over the batch
            pl.BlockSpec((tile_b, in_dim), lambda i: (i, 0)),
            # weights / biases: constant block index -> VMEM-resident
            pl.BlockSpec((in_dim, hidden), lambda i: (0, 0)),
            pl.BlockSpec((1, hidden), lambda i: (0, 0)),
            pl.BlockSpec((hidden, hidden), lambda i: (0, 0)),
            pl.BlockSpec((1, hidden), lambda i: (0, 0)),
            pl.BlockSpec((1, hidden), lambda i: (0, 0)),
            # scalar bias of the last layer -> SMEM
            pl.BlockSpec(memory_space=pltpu.MemorySpace.SMEM),
        ],
        out_specs=pl.BlockSpec((tile_b, out_dim), lambda i: (i, 0)),
        compiler_params=pltpu.CompilerParams(
            dimension_semantics=("parallel",),
        ),
    )(x, w1, b1, w2, b2, w3_row, b3_s)

    return out[:batch]


def model_forward(x, params):
    """Entry point: small batches use the fused XLA path, large use Pallas."""
    if x.shape[0] < _PALLAS_BATCH_THRESHOLD:
        return reference_forward(x, params)
    return model_forward_pallas(x, params)


def init_params(key, in_dim=32, hidden=64, out_dim=1):
    """Deterministic parameter init (mimics torch.nn.Linear uniform init)."""
    ks = jax.random.split(key, 6)

    def linear(kw, kb, fan_in, fan_out):
        bound = 1.0 / jnp.sqrt(fan_in)
        # Stored as (in, out): transpose of PyTorch's (out, in) weight.
        w = jax.random.uniform(kw, (fan_in, fan_out), jnp.float32, -bound, bound)
        b = jax.random.uniform(kb, (1, fan_out), jnp.float32, -bound, bound)
        return w, b

    w1, b1 = linear(ks[0], ks[1], in_dim, hidden)
    w2, b2 = linear(ks[2], ks[3], hidden, hidden)
    w3, b3 = linear(ks[4], ks[5], hidden, out_dim)
    return (w1, b1, w2, b2, w3, b3)


def reference_forward(x, params):
    """Pure-JAX reference mirroring torch forward() semantics."""
    w1, b1, w2, b2, w3, b3 = params
    h = jnp.maximum(x @ w1 + b1, 0.0)
    h = jnp.maximum(h @ w2 + b2, 0.0)
    return jax.nn.sigmoid(h @ w3 + b3)


if __name__ == "__main__":
    key = jax.random.PRNGKey(0)
    k_x, k_p, k_x2, k_x3 = jax.random.split(key, 4)

    in_dim, hidden, out_dim = 32, 64, 1
    params = init_params(k_p, in_dim=in_dim, hidden=hidden, out_dim=out_dim)

    # 1) Exercise the Pallas kernel with one full 512-row tile.
    batch = 512
    x = jax.random.normal(k_x, (batch, in_dim), jnp.float32)
    out = jax.block_until_ready(model_forward_pallas(x, params))
    ref = reference_forward(x, params)
    assert out.shape == (batch, out_dim), out.shape
    assert jnp.allclose(out, ref, atol=1e-5, rtol=1e-5), "mismatch vs reference (tiled)"

    # 2) Non-multiple-of-tile batch exercises the padding path (2 grid steps).
    x_odd = jax.random.normal(k_x3, (600, in_dim), jnp.float32)
    out_odd = jax.block_until_ready(model_forward(x_odd, params))
    assert out_odd.shape == (600, out_dim)
    assert jnp.allclose(out_odd, reference_forward(x_odd, params),
                        atol=1e-5, rtol=1e-5), "mismatch vs reference (padded)"

    # 3) Tiny-batch dispatcher path (skips Pallas; pure-JAX fast path).
    x_small = jax.random.normal(k_x2, (8, in_dim), jnp.float32)
    out_small = jax.block_until_ready(model_forward(x_small, params))
    assert jnp.allclose(out_small, reference_forward(x_small, params),
                        atol=1e-5, rtol=1e-5), "mismatch vs reference (small)"

    print("KERNEL_OK")
</pallas_src>

<mosaic_0001>
module attributes {stable_mosaic.version = 11 : i64} {
  func.func @_mlp_kernel(%arg0: i32, %arg1: memref<512x32xf32, #tpu.memory_space<vmem>>, %arg2: memref<32x64xf32, #tpu.memory_space<vmem>>, %arg3: memref<1x64xf32, #tpu.memory_space<vmem>>, %arg4: memref<64x64xf32, #tpu.memory_space<vmem>>, %arg5: memref<1x64xf32, #tpu.memory_space<vmem>>, %arg6: memref<1x64xf32, #tpu.memory_space<vmem>>, %arg7: memref<1x1xf32, #tpu.memory_space<smem>>, %arg8: memref<512x1xf32, #tpu.memory_space<vmem>>) attributes {dimension_semantics = [#tpu.dimension_semantics<parallel>], iteration_bounds = array<i64: 1>, scalar_prefetch = 0 : i64, scratch_operands = 0 : i64, tpu.core_type = #tpu.core_type<tc>, window_params = [{transform_indices = @transform_0, window_bounds = array<i64: 512, 32>}, {pipeline_mode = #tpu.pipeline_mode<synchronous>, transform_indices = @transform_1, window_bounds = array<i64: 32, 64>}, {pipeline_mode = #tpu.pipeline_mode<synchronous>, transform_indices = @transform_2, window_bounds = array<i64: 1, 64>}, {pipeline_mode = #tpu.pipeline_mode<synchronous>, transform_indices = @transform_3, window_bounds = array<i64: 64, 64>}, {pipeline_mode = #tpu.pipeline_mode<synchronous>, transform_indices = @transform_4, window_bounds = array<i64: 1, 64>}, {pipeline_mode = #tpu.pipeline_mode<synchronous>, transform_indices = @transform_5, window_bounds = array<i64: 1, 64>}, {transform_indices = @transform_6, window_bounds = array<i64: 1, 1>}, {transform_indices = @transform_7, window_bounds = array<i64: 512, 1>}]} {
    %c0 = arith.constant 0 : index
    %c0_0 = arith.constant 0 : index
    %0 = vector.load %arg1[%c0, %c0_0] : memref<512x32xf32, #tpu.memory_space<vmem>>, vector<512x32xf32>
    %c0_1 = arith.constant 0 : index
    %c0_2 = arith.constant 0 : index
    %1 = vector.load %arg2[%c0_1, %c0_2] : memref<32x64xf32, #tpu.memory_space<vmem>>, vector<32x64xf32>
    %cst = arith.constant dense<0.000000e+00> : vector<512x64xf32>
    %2 = tpu.matmul %0, %1, %cst {dimension_numbers = #tpu.dot_dimension_numbers<[1], [0], [0], [1], [0, 0, 1, 1], [], []>} : vector<512x32xf32>, vector<32x64xf32>, vector<512x64xf32> -> vector<512x64xf32>
    %c0_3 = arith.constant 0 : index
    %c0_4 = arith.constant 0 : index
    %3 = vector.load %arg3[%c0_3, %c0_4] : memref<1x64xf32, #tpu.memory_space<vmem>>, vector<1x64xf32>
    %4 = vector.broadcast %3 : vector<1x64xf32> to vector<512x64xf32>
    %5 = arith.addf %2, %4 : vector<512x64xf32>
    %cst_5 = arith.constant 0.000000e+00 : f32
    %6 = vector.broadcast %cst_5 : f32 to vector<512x64xf32>
    %7 = arith.maximumf %5, %6 : vector<512x64xf32>
    %c0_6 = arith.constant 0 : index
    %c0_7 = arith.constant 0 : index
    %8 = vector.load %arg4[%c0_6, %c0_7] : memref<64x64xf32, #tpu.memory_space<vmem>>, vector<64x64xf32>
    %cst_8 = arith.constant dense<0.000000e+00> : vector<512x64xf32>
    %9 = tpu.matmul %7, %8, %cst_8 {dimension_numbers = #tpu.dot_dimension_numbers<[1], [0], [0], [1], [0, 0, 1, 1], [], []>} : vector<512x64xf32>, vector<64x64xf32>, vector<512x64xf32> -> vector<512x64xf32>
    %c0_9 = arith.constant 0 : index
    %c0_10 = arith.constant 0 : index
    %10 = vector.load %arg5[%c0_9, %c0_10] : memref<1x64xf32, #tpu.memory_space<vmem>>, vector<1x64xf32>
    %11 = vector.broadcast %10 : vector<1x64xf32> to vector<512x64xf32>
    %12 = arith.addf %9, %11 : vector<512x64xf32>
    %cst_11 = arith.constant 0.000000e+00 : f32
    %13 = vector.broadcast %cst_11 : f32 to vector<512x64xf32>
    %14 = arith.maximumf %12, %13 : vector<512x64xf32>
    %c0_12 = arith.constant 0 : index
    %c0_13 = arith.constant 0 : index
    %15 = vector.load %arg6[%c0_12, %c0_13] : memref<1x64xf32, #tpu.memory_space<vmem>>, vector<1x64xf32>
    %16 = vector.broadcast %15 : vector<1x64xf32> to vector<512x64xf32>
    %17 = arith.mulf %14, %16 : vector<512x64xf32>
    %cst_14 = arith.constant dense<0.000000e+00> : vector<512xf32>
    %18 = vector.multi_reduction <add>, %17, %cst_14 [1] : vector<512x64xf32> to vector<512xf32>
    %19 = vector.shape_cast %18 : vector<512xf32> to vector<512x1xf32>
    %c0_15 = arith.constant 0 : index
    %c0_16 = arith.constant 0 : index
    %20 = memref.load %arg7[%c0_15, %c0_16] : memref<1x1xf32, #tpu.memory_space<smem>>
    %21 = vector.broadcast %20 : f32 to vector<512x1xf32>
    %22 = arith.addf %19, %21 : vector<512x1xf32>
    %23 = arith.negf %22 : vector<512x1xf32>
    %24 = math.exp %23 : vector<512x1xf32>
    %cst_17 = arith.constant 1.000000e+00 : f32
    %25 = vector.broadcast %cst_17 : f32 to vector<512x1xf32>
    %26 = arith.addf %25, %24 : vector<512x1xf32>
    %27 = arith.divf %25, %26 : vector<512x1xf32>
    %c0_18 = arith.constant 0 : index
    %c0_19 = arith.constant 0 : index
    %28 = vector.load %arg8[%c0_18, %c0_19] : memref<512x1xf32, #tpu.memory_space<vmem>>, vector<512x1xf32>
    tpu.vector_store %arg8[%c0_18, %c0_19], %27 {strides = array<i32>} : memref<512x1xf32, #tpu.memory_space<vmem>>, vector<512x1xf32>,
    return
  }
  func.func @transform_0(%arg0: i32) -> (i32, i32) {
    %c0_i32 = arith.constant 0 : i32
    %c0_i32_0 = arith.constant 0 : i32
    return %arg0, %c0_i32 : i32, i32
  }
  func.func @transform_1(%arg0: i32) -> (i32, i32) {
    %c0_i32 = arith.constant 0 : i32
    %c0_i32_0 = arith.constant 0 : i32
    %c0_i32_1 = arith.constant 0 : i32
    return %c0_i32, %c0_i32_0 : i32, i32
  }
  func.func @transform_2(%arg0: i32) -> (i32, i32) {
    %c0_i32 = arith.constant 0 : i32
    %c0_i32_0 = arith.constant 0 : i32
    %c0_i32_1 = arith.constant 0 : i32
    return %c0_i32, %c0_i32_0 : i32, i32
  }
  func.func @transform_3(%arg0: i32) -> (i32, i32) {
    %c0_i32 = arith.constant 0 : i32
    %c0_i32_0 = arith.constant 0 : i32
    %c0_i32_1 = arith.constant 0 : i32
    return %c0_i32, %c0_i32_0 : i32, i32
  }
  func.func @transform_4(%arg0: i32) -> (i32, i32) {
    %c0_i32 = arith.constant 0 : i32
    %c0_i32_0 = arith.constant 0 : i32
    %c0_i32_1 = arith.constant 0 : i32
    return %c0_i32, %c0_i32_0 : i32, i32
  }
  func.func @transform_5(%arg0: i32) -> (i32, i32) {
    %c0_i32 = arith.constant 0 : i32
    %c0_i32_0 = arith.constant 0 : i32
    %c0_i32_1 = arith.constant 0 : i32
    return %c0_i32, %c0_i32_0 : i32, i32
  }
  func.func @transform_6(%arg0: i32) -> (i32, i32) {
    %c0_i32 = arith.constant 0 : i32
    %c0_i32_0 = arith.constant 0 : i32
    %c0_i32_1 = arith.constant 0 : i32
    return %c0_i32, %c0_i32_0 : i32, i32
  }
  func.func @transform_7(%arg0: i32) -> (i32, i32) {
    %c0_i32 = arith.constant 0 : i32
    %c0_i32_0 = arith.constant 0 : i32
    return %arg0, %c0_i32 : i32, i32
  }
}

</mosaic_0001>

<bundles_post_ra>
// kernel: tpu_custom_call.1
= control target key start
LH: loop header
LB: loop body
LE: loop exit
PB: predicated region body
PF: predicated region fallthrough
CT: control target
= control target key end

     0   :  { %vm102_vm0 = vcmask 261120   ;;  %vm759_vm1 = vcmask 523264   ;;  %vm2114_vm2 = vcmask 7168   ;;  %s3998_s1 = inlined_call_operand.vmem [shape: f32[32,64], index: 1, kind: input, shape index: {}]   ;;  %s3999_s0 = inlined_call_operand.vmem [shape: f32[512,32], index: 0, kind: input, shape index: {}]   ;;  %s4000_s3 = inlined_call_operand.vmem [shape: f32[64,64], index: 3, kind: input, shape index: {}]   ;;  %s4001_s2 = inlined_call_operand.vmem [shape: f32[1,64], index: 2, kind: input, shape index: {}]   ;;  %s4002_s4 = inlined_call_operand.vmem [shape: f32[1,64], index: 4, kind: input, shape index: {}]   ;;  %s4003_s5 = inlined_call_operand.vmem [shape: f32[1,64], index: 5, kind: input, shape index: {}]   ;;  %s4004_s6 = inlined_call_operand.<no memory space> [shape: f32[1,1], index: 6, kind: input, shape index: {}]   ;;  %s4005_s7 = inlined_call_operand.vmem [shape: f32[512,1], index: 7, kind: output, shape index: {}]  }
   0x1   :  { %v94_v0 = vld [vmem:[%s3998_s1 + $0x18] sm:$0xff]  ;;  %v93_v1 = vld [vmem:[%s3998_s1 + $0x10] sm:$0xff]  ;;  %v27_v2 = vld [vmem:[%s3999_s0] sm:$0xff] }
   0x2   :  { %2518 = vmatprep.subr.mxu0 %v94_v0  ;;  %v92_v3 = vld [vmem:[%s3998_s1 + $0x8] sm:$0xff]  ;;  %2526 = vmatprep.mubr.msk.f32.mxu0 %vm102_vm0, %v27_v2  ;;  %v91_v4 = vld [vmem:[%s3998_s1] sm:$0xff]  ;;  %v29_v6 = vld [vmem:[%s3999_s0 + $0x10] sm:$0xff] }
   0x3   :  { %2519 = vmatpush3.msra.mxu0 %v94_v0  ;;  %v28_v5 = vld [vmem:[%s3999_s0 + $0x8] sm:$0xff]  ;;  %v30_v7 = vld [vmem:[%s3999_s0 + $0x18] sm:$0xff]  ;;  %v31_v8 = vld [vmem:[%s3999_s0 + $0x20] sm:$0xff] }
   0x4   :  { %2520 = vmatprep.subr.mxu0 %v93_v1  ;;  %v32_v9 = vld [vmem:[%s3999_s0 + $0x28] sm:$0xff]  ;;  %v751_v10 = vld [vmem:[%s4000_s3 + $0x38] sm:$0xff]  ;;  %v33_v11 = vld [vmem:[%s3999_s0 + $0x30] sm:$0xff] }
   0x5   :  { %2521 = vmatpush3.msra.mxu0 %v93_v1  ;;  %2734 = vmatprep.subr.mxu1 %v751_v10  ;;  %v750_v12 = vld [vmem:[%s4000_s3 + $0x30] sm:$0xff]  ;;  %v34_v13 = vld [vmem:[%s3999_s0 + $0x38] sm:$0xff]  ;;  %v35_v14 = vld [vmem:[%s3999_s0 + $0x40] sm:$0xff] }
   0x6   :  { %2522 = vmatprep.subr.mxu0 %v92_v3  ;;  %2742 = vmatpush3.msra.mxu1 %v751_v10  ;;  %v749_v15 = vld [vmem:[%s4000_s3 + $0x28] sm:$0xff]  ;;  %v37_v17 = vld [vmem:[%s3999_s0 + $0x50] sm:$0xff]  ;;  %v748_v18 = vld [vmem:[%s4000_s3 + $0x20] sm:$0xff] }
   0x7   :  { %2523 = vmatpush3.msra.mxu0 %v92_v3  ;;  %2735 = vmatprep.subr.mxu1 %v750_v12  ;;  %v36_v16 = vld [vmem:[%s3999_s0 + $0x48] sm:$0xff]  ;;  %v747_v19 = vld [vmem:[%s4000_s3 + $0x18] sm:$0xff]  ;;  %v746_v21 = vld [vmem:[%s4000_s3 + $0x10] sm:$0xff] }
   0x8   :  { %2524 = vmatprep.subr.mxu0 %v91_v4  ;;  %2743 = vmatpush3.msra.mxu1 %v750_v12  ;;  %v38_v20 = vld [vmem:[%s3999_s0 + $0x58] sm:$0xff]  ;;  %v39_v22 = vld [vmem:[%s3999_s0 + $0x60] sm:$0xff]  ;;  %v745_v23 = vld [vmem:[%s4000_s3 + $0x8] sm:$0xff] }
   0x9   :  { %2525 = vmatpush3.msra.mxu0 %v91_v4  ;;  %2736 = vmatprep.subr.mxu1 %v749_v15  ;;  %v40_v24 = vld [vmem:[%s3999_s0 + $0x68] sm:$0xff]  ;;  %v744_v25 = vld [vmem:[%s4000_s3] sm:$0xff]  ;;  %v41_v26 = vld [vmem:[%s3999_s0 + $0x70] sm:$0xff] }
   0xa   :  { %2527 = vmatmul.mubr.msk.f32.vlgmr.msra.gmra.mxu0 %vm102_vm0, %v28_v5  ;;  %2622 = vmatprep.subr.mxu0 %v751_v10  ;;  %v42_v27 = vld [vmem:[%s3999_s0 + $0x78] sm:$0xff]  ;;  %v43_v28 = vld [vmem:[%s3999_s0 + $0x80] sm:$0xff]  ;;  %v44_v29 = vld [vmem:[%s3999_s0 + $0x88] sm:$0xff] }
   0xb   :  { %2529 = vmatprep.mubr.msk.f32.mxu0 %vm102_vm0, %v29_v6  ;;  %2623 = vmatpush3.msra.mxu0 %v751_v10  ;;  %v45_v30 = vld [vmem:[%s3999_s0 + $0x90] sm:$0xff]  ;;  %v46_v31 = vld [vmem:[%s3999_s0 + $0x98] sm:$0xff]  ;;  %v47_v32 = vld [vmem:[%s3999_s0 + $0xa0] sm:$0xff] }
   0xc   :  { %2624 = vmatprep.subr.mxu0 %v750_v12  ;;  %2744 = vmatpush3.msra.mxu1 %v749_v15  ;;  %v48_v33 = vld [vmem:[%s3999_s0 + $0xa8] sm:$0xff]  ;;  %v49_v34 = vld [vmem:[%s3999_s0 + $0xb0] sm:$0xff]  ;;  %v50_v35 = vld [vmem:[%s3999_s0 + $0xb8] sm:$0xff] }
   0xd   :  { %2625 = vmatpush3.msra.mxu0 %v750_v12  ;;  %2737 = vmatprep.subr.mxu1 %v748_v18  ;;  %v51_v36 = vld [vmem:[%s3999_s0 + $0xc0] sm:$0xff]  ;;  %v52_v37 = vld [vmem:[%s3999_s0 + $0xc8] sm:$0xff]  ;;  %v53_v38 = vld [vmem:[%s3999_s0 + $0xd0] sm:$0xff] }
   0xe   :  { %2530 = vmatmul.mubr.msk.f32.gmra.mxu0 %vm102_vm0, %v30_v7  ;;  %2626 = vmatprep.subr.mxu0 %v749_v15  ;;  %v54_v39 = vld [vmem:[%s3999_s0 + $0xd8] sm:$0xff]  ;;  %v55_v40 = vld [vmem:[%s3999_s0 + $0xe0] sm:$0xff]  ;;  %v56_v41 = vld [vmem:[%s3999_s0 + $0xe8] sm:$0xff] }
   0xf   :  { %2532 = vmatprep.mubr.msk.f32.mxu0 %vm102_vm0, %v31_v8  ;;  %2627 = vmatpush3.msra.mxu0 %v749_v15  ;;  %v57_v42 = vld [vmem:[%s3999_s0 + $0xf0] sm:$0xff]  ;;  %v58_v43 = vld [vmem:[%s3999_s0 + $0xf8] sm:$0xff]  ;;  %v59_v44 = vld [vmem:[%s3999_s0 + $0x100] sm:$0xff] }
  0x10   :  { %2628 = vmatprep.subr.mxu0 %v748_v18  ;;  %2745 = vmatpush3.msra.mxu1 %v748_v18  ;;  %v60_v45 = vld [vmem:[%s3999_s0 + $0x108] sm:$0xff]  ;;  %v61_v46 = vld [vmem:[%s3999_s0 + $0x110] sm:$0xff]  ;;  %v62_v47 = vld [vmem:[%s3999_s0 + $0x118] sm:$0xff] }
  0x11   :  { %2629 = vmatpush3.msra.mxu0 %v748_v18  ;;  %2738 = vmatprep.subr.mxu1 %v747_v19  ;;  %v63_v48 = vld [vmem:[%s3999_s0 + $0x120] sm:$0xff]  ;;  %v64_v49 = vld [vmem:[%s3999_s0 + $0x128] sm:$0xff]  ;;  %v65_v50 = vld [vmem:[%s3999_s0 + $0x130] sm:$0xff] }
  0x12   :  { %2533 = vmatmul.mubr.msk.f32.gmra.mxu0 %vm102_vm0, %v32_v9  ;;  %2630 = vmatprep.subr.mxu0 %v747_v19  ;;  %v66_v51 = vld [vmem:[%s3999_s0 + $0x138] sm:$0xff]  ;;  %v67_v52 = vld [vmem:[%s3999_s0 + $0x140] sm:$0xff]  ;;  %v68_v53 = vld [vmem:[%s3999_s0 + $0x148] sm:$0xff] }
  0x13   :  { %2535 = vmatprep.mubr.msk.f32.mxu0 %vm102_vm0, %v33_v11  ;;  %2631 = vmatpush3.msra.mxu0 %v747_v19  ;;  %v69_v54 = vld [vmem:[%s3999_s0 + $0x150] sm:$0xff]  ;;  %v70_v55 = vld [vmem:[%s3999_s0 + $0x158] sm:$0xff]  ;;  %v71_v56 = vld [vmem:[%s3999_s0 + $0x160] sm:$0xff] }
  0x14   :  { %2632 = vmatprep.subr.mxu0 %v746_v21  ;;  %2746 = vmatpush3.msra.mxu1 %v747_v19  ;;  %v72_v57 = vld [vmem:[%s3999_s0 + $0x168] sm:$0xff]  ;;  %v73_v58 = vld [vmem:[%s3999_s0 + $0x170] sm:$0xff]  ;;  %v74_v59 = vld [vmem:[%s3999_s0 + $0x178] sm:$0xff] }
  0x15   :  { %2633 = vmatpush3.msra.mxu0 %v746_v21  ;;  %2739 = vmatprep.subr.mxu1 %v746_v21  ;;  %v75_v60 = vld [vmem:[%s3999_s0 + $0x180] sm:$0xff]  ;;  %v76_v61 = vld [vmem:[%s3999_s0 + $0x188] sm:$0xff]  ;;  %v77_v62 = vld [vmem:[%s3999_s0 + $0x190] sm:$0xff] }
  0x16   :  { %2536 = vmatmul.mubr.msk.f32.gmra.mxu0 %vm102_vm0, %v34_v13  ;;  %2634 = vmatprep.subr.mxu0 %v745_v23  ;;  %v78_v63 = vld [vmem:[%s3999_s0 + $0x198] sm:$0xff]  ;;  %v79_v0 = vld [vmem:[%s3999_s0 + $0x1a0] sm:$0xff]  ;;  %v80_v1 = vld [vmem:[%s3999_s0 + $0x1a8] sm:$0xff] }
  0x17   :  { %2538 = vmatprep.mubr.msk.f32.mxu0 %vm102_vm0, %v35_v14  ;;  %2635 = vmatpush3.msra.mxu0 %v745_v23  ;;  %v81_v2 = vld [vmem:[%s3999_s0 + $0x1b0] sm:$0xff]  ;;  %v82_v3 = vld [vmem:[%s3999_s0 + $0x1b8] sm:$0xff]  ;;  %v83_v4 = vld [vmem:[%s3999_s0 + $0x1c0] sm:$0xff] }
  0x18   :  { %2636 = vmatprep.subr.mxu0 %v744_v25  ;;  %2747 = vmatpush3.msra.mxu1 %v746_v21  ;;  %v84_v5 = vld [vmem:[%s3999_s0 + $0x1c8] sm:$0xff]  ;;  %v85_v6 = vld [vmem:[%s3999_s0 + $0x1d0] sm:$0xff]  ;;  %v86_v7 = vld [vmem:[%s3999_s0 + $0x1d8] sm:$0xff] }
  0x19   :  { %2637 = vmatpush3.msra.mxu0 %v744_v25  ;;  %2740 = vmatprep.subr.mxu1 %v745_v23  ;;  %v87_v8 = vld [vmem:[%s3999_s0 + $0x1e0] sm:$0xff]  ;;  %v88_v9 = vld [vmem:[%s3999_s0 + $0x1e8] sm:$0xff]  ;;  %v89_v10 = vld [vmem:[%s3999_s0 + $0x1f0] sm:$0xff] }
  0x1a   :  { %2539 = vmatmul.mubr.msk.f32.gmra.mxu0 %vm102_vm0, %v36_v16  ;;  %2748 = vmatpush3.msra.mxu1 %v745_v23  ;;  %v90_v11 = vld [vmem:[%s3999_s0 + $0x1f8] sm:$0xff]  ;;  %v3341_v12 = vld [vmem:[%s4001_s2] ss:$0 sm:$0xff] }
  0x1b   :  { %2541 = vmatprep.mubr.msk.f32.mxu0 %vm102_vm0, %v37_v17  ;;  %2741 = vmatprep.subr.mxu1 %v744_v25 }
  0x1c   :  { %2749 = vmatpush3.msra.mxu1 %v744_v25 }
  0x1e   :  { %2542 = vmatmul.mubr.msk.f32.gmra.mxu0 %vm102_vm0, %v38_v20 }
  0x1f   :  { %2544 = vmatprep.mubr.msk.f32.mxu0 %vm102_vm0, %v39_v22 }
  0x22   :  { %2545 = vmatmul.mubr.msk.f32.gmra.mxu0 %vm102_vm0, %v40_v24 }
  0x23   :  { %2547 = vmatprep.mubr.msk.f32.mxu0 %vm102_vm0, %v41_v26 }
  0x26   :  { %2548 = vmatmul.mubr.msk.f32.gmra.mxu0 %vm102_vm0, %v42_v27 }
  0x27   :  { %2550 = vmatprep.mubr.msk.f32.mxu0 %vm102_vm0, %v43_v28 }
  0x2a   :  { %2551 = vmatmul.mubr.msk.f32.gmra.mxu0 %vm102_vm0, %v44_v29 }
  0x2b   :  { %2553 = vmatprep.mubr.msk.f32.mxu0 %vm102_vm0, %v45_v30 }
  0x2e   :  { %2554 = vmatmul.mubr.msk.f32.gmra.mxu0 %vm102_vm0, %v46_v31 }
  0x2f   :  { %2556 = vmatprep.mubr.msk.f32.mxu0 %vm102_vm0, %v47_v32 }
  0x32   :  { %2557 = vmatmul.mubr.msk.f32.gmra.mxu0 %vm102_vm0, %v48_v33 }
  0x33   :  { %2559 = vmatprep.mubr.msk.f32.mxu0 %vm102_vm0, %v49_v34 }
  0x36   :  { %2560 = vmatmul.mubr.msk.f32.gmra.mxu0 %vm102_vm0, %v50_v35 }
  0x37   :  { %2562 = vmatprep.mubr.msk.f32.mxu0 %vm102_vm0, %v51_v36 }
  0x3a   :  { %2563 = vmatmul.mubr.msk.f32.gmra.mxu0 %vm102_vm0, %v52_v37 }
  0x3b   :  { %2565 = vmatprep.mubr.msk.f32.mxu0 %vm102_vm0, %v53_v38 }
  0x3e   :  { %2566 = vmatmul.mubr.msk.f32.gmra.mxu0 %vm102_vm0, %v54_v39 }
  0x3f   :  { %2568 = vmatprep.mubr.msk.f32.mxu0 %vm102_vm0, %v55_v40 }
  0x42   :  { %2569 = vmatmul.mubr.msk.f32.gmra.mxu0 %vm102_vm0, %v56_v41 }
  0x43   :  { %2571 = vmatprep.mubr.msk.f32.mxu0 %vm102_vm0, %v57_v42 }
  0x46   :  { %2572 = vmatmul.mubr.msk.f32.gmra.mxu0 %vm102_vm0, %v58_v43 }
  0x47   :  { %2574 = vmatprep.mubr.msk.f32.mxu0 %vm102_vm0, %v59_v44 }
  0x4a   :  { %2575 = vmatmul.mubr.msk.f32.gmra.mxu0 %vm102_vm0, %v60_v45 }
  0x4b   :  { %2577 = vmatprep.mubr.msk.f32.mxu0 %vm102_vm0, %v61_v46 }
  0x4e   :  { %2578 = vmatmul.mubr.msk.f32.gmra.mxu0 %vm102_vm0, %v62_v47 }
  0x4f   :  { %2580 = vmatprep.mubr.msk.f32.mxu0 %vm102_vm0, %v63_v48 }
  0x52   :  { %2581 = vmatmul.mubr.msk.f32.gmra.mxu0 %vm102_vm0, %v64_v49 }
  0x53   :  { %2583 = vmatprep.mubr.msk.f32.mxu0 %vm102_vm0, %v65_v50 }
  0x56   :  { %2584 = vmatmul.mubr.msk.f32.gmra.mxu0 %vm102_vm0, %v66_v51 }
  0x57   :  { %2586 = vmatprep.mubr.msk.f32.mxu0 %vm102_vm0, %v67_v52 }
  0x5a   :  { %2587 = vmatmul.mubr.msk.f32.gmra.mxu0 %vm102_vm0, %v68_v53 }
  0x5b   :  { %2589 = vmatprep.mubr.msk.f32.mxu0 %vm102_vm0, %v69_v54 }
  0x5e   :  { %2590 = vmatmul.mubr.msk.f32.gmra.mxu0 %vm102_vm0, %v70_v55 }
  0x5f   :  { %2592 = vmatprep.mubr.msk.f32.mxu0 %vm102_vm0, %v71_v56 }
  0x62   :  { %2593 = vmatmul.mubr.msk.f32.gmra.mxu0 %vm102_vm0, %v72_v57 }
  0x63   :  { %2595 = vmatprep.mubr.msk.f32.mxu0 %vm102_vm0, %v73_v58 }
  0x66   :  { %2596 = vmatmul.mubr.msk.f32.gmra.mxu0 %vm102_vm0, %v74_v59 }
  0x67   :  { %2598 = vmatprep.mubr.msk.f32.mxu0 %vm102_vm0, %v75_v60 }
  0x6a   :  { %2599 = vmatmul.mubr.msk.f32.gmra.mxu0 %vm102_vm0, %v76_v61 }
  0x6b   :  { %2601 = vmatprep.mubr.msk.f32.mxu0 %vm102_vm0, %v77_v62 }
  0x6e   :  { %2602 = vmatmul.mubr.msk.f32.gmra.mxu0 %vm102_vm0, %v78_v63 }
  0x6f   :  { %2604 = vmatprep.mubr.msk.f32.mxu0 %vm102_vm0, %v79_v0 }
  0x72   :  { %2605 = vmatmul.mubr.msk.f32.gmra.mxu0 %vm102_vm0, %v80_v1 }
  0x73   :  { %2607 = vmatprep.mubr.msk.f32.mxu0 %vm102_vm0, %v81_v2 }
  0x76   :  { %2608 = vmatmul.mubr.msk.f32.gmra.mxu0 %vm102_vm0, %v82_v3 }
  0x77   :  { %2610 = vmatprep.mubr.msk.f32.mxu0 %vm102_vm0, %v83_v4 }
  0x7a   :  { %2611 = vmatmul.mubr.msk.f32.gmra.mxu0 %vm102_vm0, %v84_v5 }
  0x7b   :  { %2613 = vmatprep.mubr.msk.f32.mxu0 %vm102_vm0, %v85_v6 }
  0x7e   :  { %2614 = vmatmul.mubr.msk.f32.gmra.mxu0 %vm102_vm0, %v86_v7 }
  0x7f   :  { %2616 = vmatprep.mubr.msk.f32.mxu0 %vm102_vm0, %v87_v8 }
  0x82   :  { %2617 = vmatmul.mubr.msk.f32.gmra.mxu0 %vm102_vm0, %v88_v9 }
  0x83   :  { %2619 = vmatprep.mubr.msk.f32.mxu0 %vm102_vm0, %v89_v10 }
  0x86   :  { %2620 = vmatmul.mubr.msk.f32.gmra.mxu0 %vm102_vm0, %v90_v11 }
  0xca   :  { %v2528_v13 = vpop.f32.mrf.mxu0 }
  0xcb   :  { %v367_v14 = vadd.f32 %v2528_v13, %v3341_v12 }
  0xcc   :  { %v361_v15 = vpop.f32.mrf.mxu0 }
  0xcd   :  { %v362_v16 = vadd.f32 %v3341_v12, %v361_v15  ;;  %v681_v19 = vmax.f32 %v367_v14, 0.0 }
  0xce   :  { %v2531_v17 = vpop.f32.mrf.mxu0 }
  0xcf   :  { %v680_v18 = vmax.f32 %v362_v16, 0.0  ;;  %v377_v20 = vadd.f32 %v2531_v17, %v3341_v12 }
  0xd0   :  { %v371_v21 = vpop.f32.mrf.mxu0 }
  0xd1   :  { %v372_v22 = vadd.f32 %v3341_v12, %v371_v21  ;;  %2638 = vmatprep.mubr.msk.f32.mxu0 %vm759_vm1, %v680_v18  ;;  %v683_v26 = vmax.f32 %v377_v20, 0.0 }
  0xd2   :  { %v2534_v23 = vpop.f32.mrf.mxu0  ;;  %2639 = vmatmul.mubr.msk.f32.vlgmr.msra.gmra.mxu0 %vm759_vm1, %v681_v19 }
  0xd3   :  { %v682_v24 = vmax.f32 %v372_v22, 0.0  ;;  %v387_v25 = vadd.f32 %v2534_v23, %v3341_v12 }
  0xd4   :  { %v381_v27 = vpop.f32.mrf.mxu0 }
  0xd5   :  { %v382_v28 = vadd.f32 %v3341_v12, %v381_v27  ;;  %2641 = vmatprep.mubr.msk.f32.mxu1 %vm759_vm1, %v682_v24  ;;  %v685_v29 = vmax.f32 %v387_v25, 0.0 }
  0xd6   :  { %v2537_v30 = vpop.f32.mrf.mxu0  ;;  %2642 = vmatmul.mubr.msk.f32.vlgmr.msra.gmra.mxu1 %vm759_vm1, %v683_v26 }
  0xd7   :  { %v684_v31 = vmax.f32 %v382_v28, 0.0  ;;  %v397_v32 = vadd.f32 %v2537_v30, %v3341_v12 }
  0xd8   :  { %v391_v33 = vpop.f32.mrf.mxu0 }
  0xd9   :  { %v392_v34 = vadd.f32 %v3341_v12, %v391_v33  ;;  %2644 = vmatprep.mubr.msk.f32.mxu1 %vm759_vm1, %v684_v31  ;;  %v687_v35 = vmax.f32 %v397_v32, 0.0 }
  0xda   :  { %v2540_v36 = vpop.f32.mrf.mxu0  ;;  %2645 = vmatmul.mubr.msk.f32.gmra.mxu1 %vm759_vm1, %v685_v29 }
  0xdb   :  { %v686_v37 = vmax.f32 %v392_v34, 0.0  ;;  %v407_v38 = vadd.f32 %v2540_v36, %v3341_v12 }
  0xdc   :  { %v401_v39 = vpop.f32.mrf.mxu0 }
  0xdd   :  { %v402_v40 = vadd.f32 %v3341_v12, %v401_v39  ;;  %2647 = vmatprep.mubr.msk.f32.mxu1 %vm759_vm1, %v686_v37  ;;  %v689_v41 = vmax.f32 %v407_v38, 0.0 }
  0xde   :  { %v2543_v42 = vpop.f32.mrf.mxu0  ;;  %2648 = vmatmul.mubr.msk.f32.gmra.mxu1 %vm759_vm1, %v687_v35 }
  0xdf   :  { %v688_v43 = vmax.f32 %v402_v40, 0.0  ;;  %v417_v44 = vadd.f32 %v2543_v42, %v3341_v12 }
  0xe0   :  { %v411_v45 = vpop.f32.mrf.mxu0 }
  0xe1   :  { %v412_v46 = vadd.f32 %v3341_v12, %v411_v45  ;;  %2650 = vmatprep.mubr.msk.f32.mxu1 %vm759_vm1, %v688_v43  ;;  %v691_v47 = vmax.f32 %v417_v44, 0.0 }
  0xe2   :  { %v2546_v48 = vpop.f32.mrf.mxu0  ;;  %2651 = vmatmul.mubr.msk.f32.gmra.mxu1 %vm759_vm1, %v689_v41 }
  0xe3   :  { %v690_v49 = vmax.f32 %v412_v46, 0.0  ;;  %v427_v50 = vadd.f32 %v2546_v48, %v3341_v12 }
  0xe4   :  { %v421_v51 = vpop.f32.mrf.mxu0 }
  0xe5   :  { %v422_v52 = vadd.f32 %v3341_v12, %v421_v51  ;;  %2653 = vmatprep.mubr.msk.f32.mxu1 %vm759_vm1, %v690_v49  ;;  %v693_v53 = vmax.f32 %v427_v50, 0.0 }
  0xe6   :  { %v2549_v54 = vpop.f32.mrf.mxu0  ;;  %2654 = vmatmul.mubr.msk.f32.gmra.mxu1 %vm759_vm1, %v691_v47 }
  0xe7   :  { %v692_v55 = vmax.f32 %v422_v52, 0.0  ;;  %v437_v56 = vadd.f32 %v2549_v54, %v3341_v12 }
  0xe8   :  { %v431_v57 = vpop.f32.mrf.mxu0 }
  0xe9   :  { %v432_v58 = vadd.f32 %v3341_v12, %v431_v57  ;;  %2656 = vmatprep.mubr.msk.f32.mxu1 %vm759_vm1, %v692_v55  ;;  %v695_v59 = vmax.f32 %v437_v56, 0.0 }
  0xea   :  { %v2552_v60 = vpop.f32.mrf.mxu0  ;;  %2657 = vmatmul.mubr.msk.f32.gmra.mxu1 %vm759_vm1, %v693_v53 }
  0xeb   :  { %v694_v61 = vmax.f32 %v432_v58, 0.0  ;;  %v447_v62 = vadd.f32 %v2552_v60, %v3341_v12 }
  0xec   :  { %v441_v63 = vpop.f32.mrf.mxu0 }
  0xed   :  { %v442_v0 = vadd.f32 %v3341_v12, %v441_v63  ;;  %2659 = vmatprep.mubr.msk.f32.mxu1 %vm759_vm1, %v694_v61  ;;  %v697_v1 = vmax.f32 %v447_v62, 0.0 }
  0xee   :  { %v2555_v2 = vpop.f32.mrf.mxu0  ;;  %2660 = vmatmul.mubr.msk.f32.gmra.mxu1 %vm759_vm1, %v695_v59 }
  0xef   :  { %v696_v3 = vmax.f32 %v442_v0, 0.0  ;;  %v457_v4 = vadd.f32 %v2555_v2, %v3341_v12 }
  0xf0   :  { %v451_v5 = vpop.f32.mrf.mxu0 }
  0xf1   :  { %v452_v6 = vadd.f32 %v3341_v12, %v451_v5  ;;  %2662 = vmatprep.mubr.msk.f32.mxu1 %vm759_vm1, %v696_v3  ;;  %v699_v7 = vmax.f32 %v457_v4, 0.0 }
  0xf2   :  { %v2558_v8 = vpop.f32.mrf.mxu0  ;;  %2663 = vmatmul.mubr.msk.f32.gmra.mxu1 %vm759_vm1, %v697_v1 }
  0xf3   :  { %v698_v9 = vmax.f32 %v452_v6, 0.0  ;;  %v467_v10 = vadd.f32 %v2558_v8, %v3341_v12 }
  0xf4   :  { %v461_v11 = vpop.f32.mrf.mxu0 }
  0xf5   :  { %v462_v13 = vadd.f32 %v3341_v12, %v461_v11  ;;  %2665 = vmatprep.mubr.msk.f32.mxu1 %vm759_vm1, %v698_v9  ;;  %v701_v14 = vmax.f32 %v467_v10, 0.0 }
  0xf6   :  { %v2561_v15 = vpop.f32.mrf.mxu0  ;;  %2666 = vmatmul.mubr.msk.f32.gmra.mxu1 %vm759_vm1, %v699_v7 }
  0xf7   :  { %v700_v16 = vmax.f32 %v462_v13, 0.0  ;;  %v477_v17 = vadd.f32 %v2561_v15, %v3341_v12 }
  0xf8   :  { %v471_v18 = vpop.f32.mrf.mxu0 }
  0xf9   :  { %v472_v19 = vadd.f32 %v3341_v12, %v471_v18  ;;  %2668 = vmatprep.mubr.msk.f32.mxu1 %vm759_vm1, %v700_v16  ;;  %v703_v20 = vmax.f32 %v477_v17, 0.0 }
  0xfa   :  { %v2564_v21 = vpop.f32.mrf.mxu0  ;;  %2669 = vmatmul.mubr.msk.f32.gmra.mxu1 %vm759_vm1, %v701_v14 }
  0xfb   :  { %v702_v22 = vmax.f32 %v472_v19, 0.0  ;;  %v487_v23 = vadd.f32 %v2564_v21, %v3341_v12 }
  0xfc   :  { %v481_v24 = vpop.f32.mrf.mxu0 }
  0xfd   :  { %v482_v25 = vadd.f32 %v3341_v12, %v481_v24  ;;  %2671 = vmatprep.mubr.msk.f32.mxu1 %vm759_vm1, %v702_v22  ;;  %v705_v26 = vmax.f32 %v487_v23, 0.0 }
  0xfe   :  { %v2567_v27 = vpop.f32.mrf.mxu0  ;;  %2672 = vmatmul.mubr.msk.f32.gmra.mxu1 %vm759_vm1, %v703_v20 }
  0xff   :  { %v704_v28 = vmax.f32 %v482_v25, 0.0  ;;  %v497_v29 = vadd.f32 %v2567_v27, %v3341_v12 }
 0x100   :  { %v491_v30 = vpop.f32.mrf.mxu0 }
 0x101   :  { %v492_v31 = vadd.f32 %v3341_v12, %v491_v30  ;;  %2674 = vmatprep.mubr.msk.f32.mxu1 %vm759_vm1, %v704_v28  ;;  %v707_v32 = vmax.f32 %v497_v29, 0.0 }
 0x102   :  { %v2570_v33 = vpop.f32.mrf.mxu0  ;;  %2675 = vmatmul.mubr.msk.f32.gmra.mxu1 %vm759_vm1, %v705_v26 }
 0x103   :  { %v706_v34 = vmax.f32 %v492_v31, 0.0  ;;  %v507_v35 = vadd.f32 %v2570_v33, %v3341_v12 }
 0x104   :  { %v501_v36 = vpop.f32.mrf.mxu0 }
 0x105   :  { %v502_v37 = vadd.f32 %v3341_v12, %v501_v36  ;;  %2677 = vmatprep.mubr.msk.f32.mxu1 %vm759_vm1, %v706_v34  ;;  %v709_v38 = vmax.f32 %v507_v35, 0.0 }
 0x106   :  { %v2573_v39 = vpop.f32.mrf.mxu0  ;;  %2678 = vmatmul.mubr.msk.f32.gmra.mxu1 %vm759_vm1, %v707_v32 }
 0x107   :  { %v708_v40 = vmax.f32 %v502_v37, 0.0  ;;  %v517_v41 = vadd.f32 %v2573_v39, %v3341_v12 }
 0x108   :  { %v511_v42 = vpop.f32.mrf.mxu0 }
 0x109   :  { %v512_v43 = vadd.f32 %v3341_v12, %v511_v42  ;;  %2680 = vmatprep.mubr.msk.f32.mxu1 %vm759_vm1, %v708_v40  ;;  %v711_v44 = vmax.f32 %v517_v41, 0.0 }
 0x10a   :  { %v2576_v45 = vpop.f32.mrf.mxu0  ;;  %2681 = vmatmul.mubr.msk.f32.gmra.mxu1 %vm759_vm1, %v709_v38 }
 0x10b   :  { %v710_v46 = vmax.f32 %v512_v43, 0.0  ;;  %v527_v47 = vadd.f32 %v2576_v45, %v3341_v12 }
 0x10c   :  { %v521_v48 = vpop.f32.mrf.mxu0 }
 0x10d   :  { %v522_v49 = vadd.f32 %v3341_v12, %v521_v48  ;;  %2683 = vmatprep.mubr.msk.f32.mxu1 %vm759_vm1, %v710_v46  ;;  %v713_v50 = vmax.f32 %v527_v47, 0.0 }
 0x10e   :  { %v2579_v51 = vpop.f32.mrf.mxu0  ;;  %2684 = vmatmul.mubr.msk.f32.gmra.mxu1 %vm759_vm1, %v711_v44 }
 0x10f   :  { %v712_v52 = vmax.f32 %v522_v49, 0.0  ;;  %v537_v53 = vadd.f32 %v2579_v51, %v3341_v12 }
 0x110   :  { %v531_v54 = vpop.f32.mrf.mxu0 }
 0x111   :  { %v532_v55 = vadd.f32 %v3341_v12, %v531_v54  ;;  %2686 = vmatprep.mubr.msk.f32.mxu1 %vm759_vm1, %v712_v52  ;;  %v715_v56 = vmax.f32 %v537_v53, 0.0 }
 0x112   :  { %v2582_v57 = vpop.f32.mrf.mxu0  ;;  %2687 = vmatmul.mubr.msk.f32.gmra.mxu1 %vm759_vm1, %v713_v50 }
 0x113   :  { %v714_v58 = vmax.f32 %v532_v55, 0.0  ;;  %v547_v59 = vadd.f32 %v2582_v57, %v3341_v12 }
 0x114   :  { %v541_v60 = vpop.f32.mrf.mxu0 }
 0x115   :  { %v542_v61 = vadd.f32 %v3341_v12, %v541_v60  ;;  %2689 = vmatprep.mubr.msk.f32.mxu1 %vm759_vm1, %v714_v58  ;;  %v717_v62 = vmax.f32 %v547_v59, 0.0 }
 0x116   :  { %v2585_v63 = vpop.f32.mrf.mxu0  ;;  %2690 = vmatmul.mubr.msk.f32.gmra.mxu1 %vm759_vm1, %v715_v56 }
 0x117   :  { %v716_v0 = vmax.f32 %v542_v61, 0.0  ;;  %v557_v1 = vadd.f32 %v2585_v63, %v3341_v12 }
 0x118   :  { %v551_v2 = vpop.f32.mrf.mxu0 }
 0x119   :  { %v552_v3 = vadd.f32 %v3341_v12, %v551_v2  ;;  %2692 = vmatprep.mubr.msk.f32.mxu1 %vm759_vm1, %v716_v0  ;;  %v719_v4 = vmax.f32 %v557_v1, 0.0 }
 0x11a   :  { %v2588_v5 = vpop.f32.mrf.mxu0  ;;  %2693 = vmatmul.mubr.msk.f32.gmra.mxu1 %vm759_vm1, %v717_v62 }
 0x11b   :  { %v718_v6 = vmax.f32 %v552_v3, 0.0  ;;  %v567_v7 = vadd.f32 %v2588_v5, %v3341_v12 }
 0x11c   :  { %v561_v8 = vpop.f32.mrf.mxu0 }
 0x11d   :  { %v562_v9 = vadd.f32 %v3341_v12, %v561_v8  ;;  %2695 = vmatprep.mubr.msk.f32.mxu1 %vm759_vm1, %v718_v6  ;;  %v721_v10 = vmax.f32 %v567_v7, 0.0 }
 0x11e   :  { %v2591_v11 = vpop.f32.mrf.mxu0  ;;  %2696 = vmatmul.mubr.msk.f32.gmra.mxu1 %vm759_vm1, %v719_v4 }
 0x11f   :  { %v720_v13 = vmax.f32 %v562_v9, 0.0  ;;  %v577_v14 = vadd.f32 %v2591_v11, %v3341_v12 }
 0x120   :  { %v571_v15 = vpop.f32.mrf.mxu0 }
 0x121   :  { %v572_v16 = vadd.f32 %v3341_v12, %v571_v15  ;;  %2698 = vmatprep.mubr.msk.f32.mxu1 %vm759_vm1, %v720_v13  ;;  %v723_v17 = vmax.f32 %v577_v14, 0.0 }
 0x122   :  { %v2594_v18 = vpop.f32.mrf.mxu0  ;;  %2699 = vmatmul.mubr.msk.f32.gmra.mxu1 %vm759_vm1, %v721_v10 }
 0x123   :  { %v722_v19 = vmax.f32 %v572_v16, 0.0  ;;  %v587_v20 = vadd.f32 %v2594_v18, %v3341_v12  ;;  %v3474_v16 = vld [vmem:[%s4002_s4] ss:$0 sm:$0xff] }
 0x124   :  { %v581_v21 = vpop.f32.mrf.mxu0 }
 0x125   :  { %v582_v22 = vadd.f32 %v3341_v12, %v581_v21  ;;  %2701 = vmatprep.mubr.msk.f32.mxu1 %vm759_vm1, %v722_v19  ;;  %v725_v23 = vmax.f32 %v587_v20, 0.0 }
 0x126   :  { %v2597_v24 = vpop.f32.mrf.mxu0  ;;  %2702 = vmatmul.mubr.msk.f32.gmra.mxu1 %vm759_vm1, %v723_v17 }
 0x127   :  { %v724_v25 = vmax.f32 %v582_v22, 0.0  ;;  %v597_v26 = vadd.f32 %v2597_v24, %v3341_v12 }
 0x128   :  { %v591_v27 = vpop.f32.mrf.mxu0 }
 0x129   :  { %v592_v28 = vadd.f32 %v3341_v12, %v591_v27  ;;  %2704 = vmatprep.mubr.msk.f32.mxu1 %vm759_vm1, %v724_v25  ;;  %v727_v29 = vmax.f32 %v597_v26, 0.0 }
 0x12a   :  { %v2600_v30 = vpop.f32.mrf.mxu0  ;;  %2705 = vmatmul.mubr.msk.f32.gmra.mxu1 %vm759_vm1, %v725_v23 }
 0x12b   :  { %v726_v31 = vmax.f32 %v592_v28, 0.0  ;;  %v607_v32 = vadd.f32 %v2600_v30, %v3341_v12 }
 0x12c   :  { %v601_v33 = vpop.f32.mrf.mxu0 }
 0x12d   :  { %v602_v34 = vadd.f32 %v3341_v12, %v601_v33  ;;  %2707 = vmatprep.mubr.msk.f32.mxu1 %vm759_vm1, %v726_v31  ;;  %v729_v35 = vmax.f32 %v607_v32, 0.0 }
 0x12e   :  { %v2603_v36 = vpop.f32.mrf.mxu0  ;;  %2708 = vmatmul.mubr.msk.f32.gmra.mxu1 %vm759_vm1, %v727_v29 }
 0x12f   :  { %v728_v37 = vmax.f32 %v602_v34, 0.0  ;;  %v617_v38 = vadd.f32 %v2603_v36, %v3341_v12 }
 0x130   :  { %v611_v39 = vpop.f32.mrf.mxu0 }
 0x131   :  { %v612_v40 = vadd.f32 %v3341_v12, %v611_v39  ;;  %2710 = vmatprep.mubr.msk.f32.mxu1 %vm759_vm1, %v728_v37  ;;  %v731_v41 = vmax.f32 %v617_v38, 0.0 }
 0x132   :  { %v2606_v42 = vpop.f32.mrf.mxu0  ;;  %2711 = vmatmul.mubr.msk.f32.gmra.mxu1 %vm759_vm1, %v729_v35 }
 0x133   :  { %v730_v43 = vmax.f32 %v612_v40, 0.0  ;;  %v627_v44 = vadd.f32 %v2606_v42, %v3341_v12 }
 0x134   :  { %v621_v45 = vpop.f32.mrf.mxu0 }
 0x135   :  { %v622_v46 = vadd.f32 %v3341_v12, %v621_v45  ;;  %2713 = vmatprep.mubr.msk.f32.mxu1 %vm759_vm1, %v730_v43  ;;  %v733_v47 = vmax.f32 %v627_v44, 0.0 }
 0x136   :  { %v2609_v48 = vpop.f32.mrf.mxu0  ;;  %2714 = vmatmul.mubr.msk.f32.gmra.mxu1 %vm759_vm1, %v731_v41 }
 0x137   :  { %v732_v49 = vmax.f32 %v622_v46, 0.0  ;;  %v637_v50 = vadd.f32 %v2609_v48, %v3341_v12 }
 0x138   :  { %v631_v51 = vpop.f32.mrf.mxu0 }
 0x139   :  { %v632_v52 = vadd.f32 %v3341_v12, %v631_v51  ;;  %2716 = vmatprep.mubr.msk.f32.mxu1 %vm759_vm1, %v732_v49  ;;  %v735_v53 = vmax.f32 %v637_v50, 0.0 }
 0x13a   :  { %v2612_v54 = vpop.f32.mrf.mxu0  ;;  %2717 = vmatmul.mubr.msk.f32.gmra.mxu1 %vm759_vm1, %v733_v47 }
 0x13b   :  { %v734_v55 = vmax.f32 %v632_v52, 0.0  ;;  %v647_v56 = vadd.f32 %v2612_v54, %v3341_v12 }
 0x13c   :  { %v641_v57 = vpop.f32.mrf.mxu0 }
 0x13d   :  { %v642_v58 = vadd.f32 %v3341_v12, %v641_v57  ;;  %2719 = vmatprep.mubr.msk.f32.mxu1 %vm759_vm1, %v734_v55  ;;  %v737_v59 = vmax.f32 %v647_v56, 0.0 }
 0x13e   :  { %v2615_v60 = vpop.f32.mrf.mxu0  ;;  %2720 = vmatmul.mubr.msk.f32.gmra.mxu1 %vm759_vm1, %v735_v53 }
 0x13f   :  { %v736_v61 = vmax.f32 %v642_v58, 0.0  ;;  %v657_v62 = vadd.f32 %v2615_v60, %v3341_v12 }
 0x140   :  { %v651_v63 = vpop.f32.mrf.mxu0 }
 0x141   :  { %v652_v0 = vadd.f32 %v3341_v12, %v651_v63  ;;  %2722 = vmatprep.mubr.msk.f32.mxu1 %vm759_vm1, %v736_v61  ;;  %v739_v1 = vmax.f32 %v657_v62, 0.0 }
 0x142   :  { %v2618_v2 = vpop.f32.mrf.mxu0  ;;  %2723 = vmatmul.mubr.msk.f32.gmra.mxu1 %vm759_vm1, %v737_v59 }
 0x143   :  { %v738_v3 = vmax.f32 %v652_v0, 0.0  ;;  %v667_v4 = vadd.f32 %v2618_v2, %v3341_v12 }
 0x144   :  { %v661_v5 = vpop.f32.mrf.mxu0 }
 0x145   :  { %v662_v6 = vadd.f32 %v3341_v12, %v661_v5  ;;  %2725 = vmatprep.mubr.msk.f32.mxu1 %vm759_vm1, %v738_v3  ;;  %v741_v7 = vmax.f32 %v667_v4, 0.0 }
 0x146   :  { %v2621_v8 = vpop.f32.mrf.mxu0  ;;  %2726 = vmatmul.mubr.msk.f32.gmra.mxu1 %vm759_vm1, %v739_v1 }
 0x147   :  { %v740_v9 = vmax.f32 %v662_v6, 0.0  ;;  %v677_v10 = vadd.f32 %v2621_v8, %v3341_v12 }
 0x148   :  { %v671_v11 = vpop.f32.mrf.mxu0 }
 0x149   :  { %v672_v13 = vadd.f32 %v3341_v12, %v671_v11  ;;  %2728 = vmatprep.mubr.msk.f32.mxu1 %vm759_vm1, %v740_v9  ;;  %v743_v14 = vmax.f32 %v677_v10, 0.0  ;;  %v3480_v12 = vld [vmem:[%s4003_s5] ss:$0 sm:$0xff] }
 0x14a   :  { %2729 = vmatmul.mubr.msk.f32.gmra.mxu1 %vm759_vm1, %v741_v7 }
 0x14b   :  { %v742_v15 = vmax.f32 %v672_v13, 0.0 }
 0x14d   :  { %2731 = vmatprep.mubr.msk.f32.mxu1 %vm759_vm1, %v742_v15 }
 0x14e   :  { %2732 = vmatmul.mubr.msk.f32.gmra.mxu1 %vm759_vm1, %v743_v14 }
 0x192   :  { %v2640_v17 = vpop.f32.mrf.mxu0 }
 0x193   :  { %v1024_v18 = vadd.f32 %v2640_v17, %v3474_v16 }
 0x194   :  { %v1018_v19 = vpop.f32.mrf.mxu0 }
 0x195   :  { %v1338_v20 = vmax.f32 %v1024_v18, 0.0  ;;  %v1019_v21 = vadd.f32 %v3474_v16, %v1018_v19 }
 0x196   :  { %v2643_v22 = vpop.f32.mrf.mxu1 }
 0x197   :  { %v1337_v23 = vmax.f32 %v1019_v21, 0.0  ;;  %v1034_v24 = vadd.f32 %v2643_v22, %v3474_v16  ;;  %v1409_v25 = vmul.f32 %v3480_v12, %v1338_v20 }
 0x198   :  { %v1028_v26 = vpop.f32.mrf.mxu1 }
 0x199   :  { %v1340_v27 = vmax.f32 %v1034_v24, 0.0  ;;  %v1029_v28 = vadd.f32 %v3474_v16, %v1028_v26  ;;  %v1475_v29 = vsel %vm759_vm1, %v1409_v25, 0.0  ;;  %v1408_v30 = vmul.f32 %v3480_v12, %v1337_v23 }
 0x19a   :  { %v2646_v31 = vpop.f32.mrf.mxu1  ;;  %1476 = vadd.xlane.f32.xlu0 %v1475_v29 }
 0x19b   :  { %v1339_v32 = vmax.f32 %v1029_v28, 0.0  ;;  %v1044_v33 = vadd.f32 %v2646_v31, %v3474_v16  ;;  %v1411_v34 = vmul.f32 %v3480_v12, %v1340_v27  ;;  %v1472_v36 = vsel %vm759_vm1, %v1408_v30, 0.0 }
 0x19c   :  { %v1038_v35 = vpop.f32.mrf.mxu1 }
 0x19d   :  { %v1342_v37 = vmax.f32 %v1044_v33, 0.0  ;;  %v1039_v38 = vadd.f32 %v3474_v16, %v1038_v35  ;;  %v1481_v39 = vsel %vm759_vm1, %v1411_v34, 0.0  ;;  %v1410_v40 = vmul.f32 %v3480_v12, %v1339_v32 }
 0x19e   :  { %1482 = vadd.xlane.f32.xlu1 %v1481_v39  ;;  %v2649_v41 = vpop.f32.mrf.mxu1  ;;  %1473 = vadd.xlane.f32.xlu0 %v1472_v36 }
 0x19f   :  { %v1341_v42 = vmax.f32 %v1039_v38, 0.0  ;;  %v1054_v43 = vadd.f32 %v2649_v41, %v3474_v16  ;;  %v1478_v45 = vsel %vm759_vm1, %v1410_v40, 0.0  ;;  %v1413_v49 = vmul.f32 %v3480_v12, %v1342_v37 }
 0x1a0   :  { %v1048_v44 = vpop.f32.mrf.mxu1 }
 0x1a1   :  { %v1344_v46 = vmax.f32 %v1054_v43, 0.0  ;;  %v1049_v47 = vadd.f32 %v3474_v16, %v1048_v44  ;;  %v1412_v48 = vmul.f32 %v3480_v12, %v1341_v42  ;;  %v1487_v58 = vsel %vm759_vm1, %v1413_v49, 0.0 }
 0x1a2   :  { %v2652_v50 = vpop.f32.mrf.mxu1  ;;  %1479 = vadd.xlane.f32.xlu1 %v1478_v45 }
 0x1a3   :  { %v1343_v51 = vmax.f32 %v1049_v47, 0.0  ;;  %v1064_v52 = vadd.f32 %v2652_v50, %v3474_v16  ;;  %v1484_v53 = vsel %vm759_vm1, %v1412_v48, 0.0  ;;  %v1415_v55 = vmul.f32 %v3480_v12, %v1344_v46 }
 0x1a4   :  { %v1058_v54 = vpop.f32.mrf.mxu1  ;;  %1485 = vadd.xlane.f32.xlu0 %v1484_v53 }
 0x1a5   :  { %v1346_v56 = vmax.f32 %v1064_v52, 0.0  ;;  %v1059_v57 = vadd.f32 %v3474_v16, %v1058_v54  ;;  %v1414_v59 = vmul.f32 %v3480_v12, %v1343_v51  ;;  %v1493_v1 = vsel %vm759_vm1, %v1415_v55, 0.0 }
 0x1a6   :  { %v2655_v60 = vpop.f32.mrf.mxu1  ;;  %1488 = vadd.xlane.f32.xlu1 %v1487_v58 }
 0x1a7   :  { %v1345_v61 = vmax.f32 %v1059_v57, 0.0  ;;  %v1074_v62 = vadd.f32 %v2655_v60, %v3474_v16  ;;  %v1490_v63 = vsel %vm759_vm1, %v1414_v59, 0.0  ;;  %v1417_v5 = vmul.f32 %v3480_v12, %v1346_v56 }
 0x1a8   :  { %v1068_v0 = vpop.f32.mrf.mxu1  ;;  %1491 = vadd.xlane.f32.xlu0 %v1490_v63 }
 0x1a9   :  { %v1348_v2 = vmax.f32 %v1074_v62, 0.0  ;;  %v1069_v3 = vadd.f32 %v3474_v16, %v1068_v0  ;;  %v1416_v4 = vmul.f32 %v3480_v12, %v1345_v61  ;;  %v1499_v15 = vsel %vm759_vm1, %v1417_v5, 0.0 }
 0x1aa   :  { %v2658_v6 = vpop.f32.mrf.mxu1  ;;  %1494 = vadd.xlane.f32.xlu1 %v1493_v1 }
 0x1ab   :  { %v1347_v7 = vmax.f32 %v1069_v3, 0.0  ;;  %v1084_v8 = vadd.f32 %v2658_v6, %v3474_v16  ;;  %v1496_v9 = vsel %vm759_vm1, %v1416_v4, 0.0  ;;  %v1419_v11 = vmul.f32 %v3480_v12, %v1348_v2 }
 0x1ac   :  { %v1078_v10 = vpop.f32.mrf.mxu1  ;;  %1497 = vadd.xlane.f32.xlu0 %v1496_v9 }
 0x1ad   :  { %v1350_v13 = vmax.f32 %v1084_v8, 0.0  ;;  %v1079_v14 = vadd.f32 %v3474_v16, %v1078_v10  ;;  %v1418_v17 = vmul.f32 %v3480_v12, %v1347_v7  ;;  %v1505_v23 = vsel %vm759_vm1, %v1419_v11, 0.0 }
 0x1ae   :  { %v2661_v18 = vpop.f32.mrf.mxu1  ;;  %1500 = vadd.xlane.f32.xlu1 %v1499_v15 }
 0x1af   :  { %v1349_v19 = vmax.f32 %v1079_v14, 0.0  ;;  %v1094_v20 = vadd.f32 %v2661_v18, %v3474_v16  ;;  %v1502_v21 = vsel %vm759_vm1, %v1418_v17, 0.0  ;;  %v1421_v27 = vmul.f32 %v3480_v12, %v1350_v13 }
 0x1b0   :  { %v1088_v22 = vpop.f32.mrf.mxu1  ;;  %1503 = vadd.xlane.f32.xlu0 %v1502_v21 }
 0x1b1   :  { %v1352_v24 = vmax.f32 %v1094_v20, 0.0  ;;  %v1089_v25 = vadd.f32 %v3474_v16, %v1088_v22  ;;  %v1420_v26 = vmul.f32 %v3480_v12, %v1349_v19  ;;  %v1511_v36 = vsel %vm759_vm1, %v1421_v27, 0.0 }
 0x1b2   :  { %v2664_v28 = vpop.f32.mrf.mxu1  ;;  %1506 = vadd.xlane.f32.xlu1 %v1505_v23 }
 0x1b3   :  { %v1351_v29 = vmax.f32 %v1089_v25, 0.0  ;;  %v1104_v30 = vadd.f32 %v2664_v28, %v3474_v16  ;;  %v1508_v31 = vsel %vm759_vm1, %v1420_v26, 0.0  ;;  %v1423_v33 = vmul.f32 %v3480_v12, %v1352_v24 }
 0x1b4   :  { %v1098_v32 = vpop.f32.mrf.mxu1  ;;  %1509 = vadd.xlane.f32.xlu0 %v1508_v31 }
 0x1b5   :  { %v1354_v34 = vmax.f32 %v1104_v30, 0.0  ;;  %v1099_v35 = vadd.f32 %v3474_v16, %v1098_v32  ;;  %v1422_v37 = vmul.f32 %v3480_v12, %v1351_v29  ;;  %v1517_v43 = vsel %vm759_vm1, %v1423_v33, 0.0 }
 0x1b6   :  { %v2667_v38 = vpop.f32.mrf.mxu1  ;;  %1512 = vadd.xlane.f32.xlu1 %v1511_v36 }
 0x1b7   :  { %v1353_v39 = vmax.f32 %v1099_v35, 0.0  ;;  %v1114_v40 = vadd.f32 %v2667_v38, %v3474_v16  ;;  %v1514_v41 = vsel %vm759_vm1, %v1422_v37, 0.0  ;;  %v1425_v47 = vmul.f32 %v3480_v12, %v1354_v34 }
 0x1b8   :  { %v1108_v42 = vpop.f32.mrf.mxu1  ;;  %1515 = vadd.xlane.f32.xlu0 %v1514_v41 }
 0x1b9   :  { %v1356_v44 = vmax.f32 %v1114_v40, 0.0  ;;  %v1109_v45 = vadd.f32 %v3474_v16, %v1108_v42  ;;  %v1424_v46 = vmul.f32 %v3480_v12, %v1353_v39  ;;  %v1523_v56 = vsel %vm759_vm1, %v1425_v47, 0.0 }
 0x1ba   :  { %v2670_v48 = vpop.f32.mrf.mxu1  ;;  %1518 = vadd.xlane.f32.xlu1 %v1517_v43 }
 0x1bb   :  { %v1355_v49 = vmax.f32 %v1109_v45, 0.0  ;;  %v1124_v50 = vadd.f32 %v2670_v48, %v3474_v16  ;;  %v1520_v51 = vsel %vm759_vm1, %v1424_v46, 0.0  ;;  %v1427_v53 = vmul.f32 %v3480_v12, %v1356_v44 }
 0x1bc   :  { %v1118_v52 = vpop.f32.mrf.mxu1  ;;  %1521 = vadd.xlane.f32.xlu0 %v1520_v51 }
 0x1bd   :  { %v1358_v54 = vmax.f32 %v1124_v50, 0.0  ;;  %v1119_v55 = vadd.f32 %v3474_v16, %v1118_v52  ;;  %v1426_v57 = vmul.f32 %v3480_v12, %v1355_v49  ;;  %v1529_v63 = vsel %vm759_vm1, %v1427_v53, 0.0 }
 0x1be   :  { %v2673_v58 = vpop.f32.mrf.mxu1  ;;  %1524 = vadd.xlane.f32.xlu1 %v1523_v56 }
 0x1bf   :  { %v1357_v59 = vmax.f32 %v1119_v55, 0.0  ;;  %v1134_v60 = vadd.f32 %v2673_v58, %v3474_v16  ;;  %v1526_v61 = vsel %vm759_vm1, %v1426_v57, 0.0  ;;  %v1429_v3 = vmul.f32 %v3480_v12, %v1358_v54 }
 0x1c0   :  { %v1128_v62 = vpop.f32.mrf.mxu1  ;;  %1527 = vadd.xlane.f32.xlu0 %v1526_v61 }
 0x1c1   :  { %v1360_v0 = vmax.f32 %v1134_v60, 0.0  ;;  %v1129_v1 = vadd.f32 %v3474_v16, %v1128_v62  ;;  %v1428_v2 = vmul.f32 %v3480_v12, %v1357_v59  ;;  %v1535_v13 = vsel %vm759_vm1, %v1429_v3, 0.0 }
 0x1c2   :  { %v2676_v4 = vpop.f32.mrf.mxu1  ;;  %1530 = vadd.xlane.f32.xlu1 %v1529_v63 }
 0x1c3   :  { %v1359_v5 = vmax.f32 %v1129_v1, 0.0  ;;  %v1144_v6 = vadd.f32 %v2676_v4, %v3474_v16  ;;  %v1532_v7 = vsel %vm759_vm1, %v1428_v2, 0.0  ;;  %v1431_v9 = vmul.f32 %v3480_v12, %v1360_v0 }
 0x1c4   :  { %v1138_v8 = vpop.f32.mrf.mxu1  ;;  %1533 = vadd.xlane.f32.xlu0 %v1532_v7 }
 0x1c5   :  { %v1362_v10 = vmax.f32 %v1144_v6, 0.0  ;;  %v1139_v11 = vadd.f32 %v3474_v16, %v1138_v8  ;;  %v1430_v14 = vmul.f32 %v3480_v12, %v1359_v5  ;;  %v1541_v21 = vsel %vm759_vm1, %v1431_v9, 0.0 }
 0x1c6   :  { %v2679_v15 = vpop.f32.mrf.mxu1  ;;  %1536 = vadd.xlane.f32.xlu1 %v1535_v13 }
 0x1c7   :  { %v1361_v17 = vmax.f32 %v1139_v11, 0.0  ;;  %v1154_v18 = vadd.f32 %v2679_v15, %v3474_v16  ;;  %v1538_v19 = vsel %vm759_vm1, %v1430_v14, 0.0  ;;  %v1433_v25 = vmul.f32 %v3480_v12, %v1362_v10 }
 0x1c8   :  { %v1148_v20 = vpop.f32.mrf.mxu1  ;;  %1539 = vadd.xlane.f32.xlu0 %v1538_v19 }
 0x1c9   :  { %v1364_v22 = vmax.f32 %v1154_v18, 0.0  ;;  %v1149_v23 = vadd.f32 %v3474_v16, %v1148_v20  ;;  %v1432_v24 = vmul.f32 %v3480_v12, %v1361_v17  ;;  %v1547_v34 = vsel %vm759_vm1, %v1433_v25, 0.0 }
 0x1ca   :  { %v2682_v26 = vpop.f32.mrf.mxu1  ;;  %1542 = vadd.xlane.f32.xlu1 %v1541_v21 }
 0x1cb   :  { %v1363_v27 = vmax.f32 %v1149_v23, 0.0  ;;  %v1164_v28 = vadd.f32 %v2682_v26, %v3474_v16  ;;  %v1544_v29 = vsel %vm759_vm1, %v1432_v24, 0.0  ;;  %v1435_v31 = vmul.f32 %v3480_v12, %v1364_v22 }
 0x1cc   :  { %v1158_v30 = vpop.f32.mrf.mxu1  ;;  %1545 = vadd.xlane.f32.xlu0 %v1544_v29 }
 0x1cd   :  { %v1366_v32 = vmax.f32 %v1164_v28, 0.0  ;;  %v1159_v33 = vadd.f32 %v3474_v16, %v1158_v30  ;;  %v1434_v35 = vmul.f32 %v3480_v12, %v1363_v27  ;;  %v1553_v41 = vsel %vm759_vm1, %v1435_v31, 0.0 }
 0x1ce   :  { %v2685_v36 = vpop.f32.mrf.mxu1  ;;  %1548 = vadd.xlane.f32.xlu1 %v1547_v34 }
 0x1cf   :  { %v1365_v37 = vmax.f32 %v1159_v33, 0.0  ;;  %v1174_v38 = vadd.f32 %v2685_v36, %v3474_v16  ;;  %v1550_v39 = vsel %vm759_vm1, %v1434_v35, 0.0  ;;  %v1437_v45 = vmul.f32 %v3480_v12, %v1366_v32 }
 0x1d0   :  { %v1168_v40 = vpop.f32.mrf.mxu1  ;;  %1551 = vadd.xlane.f32.xlu0 %v1550_v39 }
 0x1d1   :  { %v1368_v42 = vmax.f32 %v1174_v38, 0.0  ;;  %v1169_v43 = vadd.f32 %v3474_v16, %v1168_v40  ;;  %v1436_v44 = vmul.f32 %v3480_v12, %v1365_v37  ;;  %v1559_v54 = vsel %vm759_vm1, %v1437_v45, 0.0 }
 0x1d2   :  { %v2688_v46 = vpop.f32.mrf.mxu1  ;;  %1554 = vadd.xlane.f32.xlu1 %v1553_v41 }
 0x1d3   :  { %v1367_v47 = vmax.f32 %v1169_v43, 0.0  ;;  %v1184_v48 = vadd.f32 %v2688_v46, %v3474_v16  ;;  %v1556_v49 = vsel %vm759_vm1, %v1436_v44, 0.0  ;;  %v1439_v51 = vmul.f32 %v3480_v12, %v1368_v42 }
 0x1d4   :  { %v1178_v50 = vpop.f32.mrf.mxu1  ;;  %1557 = vadd.xlane.f32.xlu0 %v1556_v49 }
 0x1d5   :  { %v1370_v52 = vmax.f32 %v1184_v48, 0.0  ;;  %v1179_v53 = vadd.f32 %v3474_v16, %v1178_v50  ;;  %v1438_v55 = vmul.f32 %v3480_v12, %v1367_v47  ;;  %v1565_v61 = vsel %vm759_vm1, %v1439_v51, 0.0 }
 0x1d6   :  { %v2691_v56 = vpop.f32.mrf.mxu1  ;;  %1560 = vadd.xlane.f32.xlu1 %v1559_v54 }
 0x1d7   :  { %v1369_v57 = vmax.f32 %v1179_v53, 0.0  ;;  %v1194_v58 = vadd.f32 %v2691_v56, %v3474_v16  ;;  %v1562_v59 = vsel %vm759_vm1, %v1438_v55, 0.0  ;;  %v1441_v1 = vmul.f32 %v3480_v12, %v1370_v52 }
 0x1d8   :  { %v1188_v60 = vpop.f32.mrf.mxu1  ;;  %1563 = vadd.xlane.f32.xlu0 %v1562_v59 }
 0x1d9   :  { %v1372_v62 = vmax.f32 %v1194_v58, 0.0  ;;  %v1189_v63 = vadd.f32 %v3474_v16, %v1188_v60  ;;  %v1440_v0 = vmul.f32 %v3480_v12, %v1369_v57  ;;  %v1571_v10 = vsel %vm759_vm1, %v1441_v1, 0.0 }
 0x1da   :  { %v2694_v2 = vpop.f32.mrf.mxu1  ;;  %1566 = vadd.xlane.f32.xlu1 %v1565_v61 }
 0x1db   :  { %v1371_v3 = vmax.f32 %v1189_v63, 0.0  ;;  %v1204_v4 = vadd.f32 %v2694_v2, %v3474_v16  ;;  %v1568_v5 = vsel %vm759_vm1, %v1440_v0, 0.0  ;;  %v1443_v7 = vmul.f32 %v3480_v12, %v1372_v62 }
 0x1dc   :  { %v1198_v6 = vpop.f32.mrf.mxu1  ;;  %1569 = vadd.xlane.f32.xlu0 %v1568_v5 }
 0x1dd   :  { %v1374_v8 = vmax.f32 %v1204_v4, 0.0  ;;  %v1199_v9 = vadd.f32 %v3474_v16, %v1198_v6  ;;  %v1442_v11 = vmul.f32 %v3480_v12, %v1371_v3  ;;  %v1577_v19 = vsel %vm759_vm1, %v1443_v7, 0.0 }
 0x1de   :  { %v2697_v13 = vpop.f32.mrf.mxu1  ;;  %1572 = vadd.xlane.f32.xlu1 %v1571_v10 }
 0x1df   :  { %v1373_v14 = vmax.f32 %v1199_v9, 0.0  ;;  %v1214_v15 = vadd.f32 %v2697_v13, %v3474_v16  ;;  %v1574_v17 = vsel %vm759_vm1, %v1442_v11, 0.0  ;;  %v1445_v23 = vmul.f32 %v3480_v12, %v1374_v8 }
 0x1e0   :  { %v1208_v18 = vpop.f32.mrf.mxu1  ;;  %1575 = vadd.xlane.f32.xlu0 %v1574_v17 }
 0x1e1   :  { %v1376_v20 = vmax.f32 %v1214_v15, 0.0  ;;  %v1209_v21 = vadd.f32 %v3474_v16, %v1208_v18  ;;  %v1444_v22 = vmul.f32 %v3480_v12, %v1373_v14  ;;  %v1583_v32 = vsel %vm759_vm1, %v1445_v23, 0.0 }
 0x1e2   :  { %v2700_v24 = vpop.f32.mrf.mxu1  ;;  %1578 = vadd.xlane.f32.xlu1 %v1577_v19 }
 0x1e3   :  { %v1375_v25 = vmax.f32 %v1209_v21, 0.0  ;;  %v1224_v26 = vadd.f32 %v2700_v24, %v3474_v16  ;;  %v1580_v27 = vsel %vm759_vm1, %v1444_v22, 0.0  ;;  %v1447_v29 = vmul.f32 %v3480_v12, %v1376_v20 }
 0x1e4   :  { %v1218_v28 = vpop.f32.mrf.mxu1  ;;  %1581 = vadd.xlane.f32.xlu0 %v1580_v27 }
 0x1e5   :  { %v1378_v30 = vmax.f32 %v1224_v26, 0.0  ;;  %v1219_v31 = vadd.f32 %v3474_v16, %v1218_v28  ;;  %v1446_v33 = vmul.f32 %v3480_v12, %v1375_v25  ;;  %v1589_v39 = vsel %vm759_vm1, %v1447_v29, 0.0 }
 0x1e6   :  { %v2703_v34 = vpop.f32.mrf.mxu1  ;;  %1584 = vadd.xlane.f32.xlu1 %v1583_v32 }
 0x1e7   :  { %v1377_v35 = vmax.f32 %v1219_v31, 0.0  ;;  %v1234_v36 = vadd.f32 %v2703_v34, %v3474_v16  ;;  %v1586_v37 = vsel %vm759_vm1, %v1446_v33, 0.0  ;;  %v1449_v43 = vmul.f32 %v3480_v12, %v1378_v30 }
 0x1e8   :  { %v1228_v38 = vpop.f32.mrf.mxu1  ;;  %1587 = vadd.xlane.f32.xlu0 %v1586_v37 }
 0x1e9   :  { %v1380_v40 = vmax.f32 %v1234_v36, 0.0  ;;  %v1229_v41 = vadd.f32 %v3474_v16, %v1228_v38  ;;  %v1448_v42 = vmul.f32 %v3480_v12, %v1377_v35  ;;  %v1595_v52 = vsel %vm759_vm1, %v1449_v43, 0.0 }
 0x1ea   :  { %v2706_v44 = vpop.f32.mrf.mxu1  ;;  %1590 = vadd.xlane.f32.xlu1 %v1589_v39 }
 0x1eb   :  { %v1379_v45 = vmax.f32 %v1229_v41, 0.0  ;;  %v1244_v46 = vadd.f32 %v2706_v44, %v3474_v16  ;;  %v1592_v47 = vsel %vm759_vm1, %v1448_v42, 0.0  ;;  %v1451_v49 = vmul.f32 %v3480_v12, %v1380_v40 }
 0x1ec   :  { %v1238_v48 = vpop.f32.mrf.mxu1  ;;  %1593 = vadd.xlane.f32.xlu0 %v1592_v47 }
 0x1ed   :  { %v1382_v50 = vmax.f32 %v1244_v46, 0.0  ;;  %v1239_v51 = vadd.f32 %v3474_v16, %v1238_v48  ;;  %v1450_v53 = vmul.f32 %v3480_v12, %v1379_v45  ;;  %v1601_v59 = vsel %vm759_vm1, %v1451_v49, 0.0 }
 0x1ee   :  { %v2709_v54 = vpop.f32.mrf.mxu1  ;;  %1596 = vadd.xlane.f32.xlu1 %v1595_v52 }
 0x1ef   :  { %v1381_v55 = vmax.f32 %v1239_v51, 0.0  ;;  %v1254_v56 = vadd.f32 %v2709_v54, %v3474_v16  ;;  %v1598_v57 = vsel %vm759_vm1, %v1450_v53, 0.0  ;;  %v1453_v63 = vmul.f32 %v3480_v12, %v1382_v50 }
 0x1f0   :  { %v1248_v58 = vpop.f32.mrf.mxu1  ;;  %1599 = vadd.xlane.f32.xlu0 %v1598_v57 }
 0x1f1   :  { %v1384_v60 = vmax.f32 %v1254_v56, 0.0  ;;  %v1249_v61 = vadd.f32 %v3474_v16, %v1248_v58  ;;  %v1452_v62 = vmul.f32 %v3480_v12, %v1381_v55  ;;  %v1607_v8 = vsel %vm759_vm1, %v1453_v63, 0.0 }
 0x1f2   :  { %v2712_v0 = vpop.f32.mrf.mxu1  ;;  %1602 = vadd.xlane.f32.xlu1 %v1601_v59 }
 0x1f3   :  { %v1383_v1 = vmax.f32 %v1249_v61, 0.0  ;;  %v1264_v2 = vadd.f32 %v2712_v0, %v3474_v16  ;;  %v1604_v3 = vsel %vm759_vm1, %v1452_v62, 0.0  ;;  %v1455_v5 = vmul.f32 %v3480_v12, %v1384_v60 }
 0x1f4   :  { %v1258_v4 = vpop.f32.mrf.mxu1  ;;  %1605 = vadd.xlane.f32.xlu0 %v1604_v3 }
 0x1f5   :  { %v1386_v6 = vmax.f32 %v1264_v2, 0.0  ;;  %v1259_v7 = vadd.f32 %v3474_v16, %v1258_v4  ;;  %v1454_v9 = vmul.f32 %v3480_v12, %v1383_v1  ;;  %v1613_v17 = vsel %vm759_vm1, %v1455_v5, 0.0 }
 0x1f6   :  { %v2715_v10 = vpop.f32.mrf.mxu1  ;;  %1608 = vadd.xlane.f32.xlu1 %v1607_v8 }
 0x1f7   :  { %v1385_v11 = vmax.f32 %v1259_v7, 0.0  ;;  %v1274_v13 = vadd.f32 %v2715_v10, %v3474_v16  ;;  %v1610_v14 = vsel %vm759_vm1, %v1454_v9, 0.0  ;;  %v1457_v21 = vmul.f32 %v3480_v12, %v1386_v6 }
 0x1f8   :  { %v1268_v15 = vpop.f32.mrf.mxu1  ;;  %1611 = vadd.xlane.f32.xlu0 %v1610_v14 }
 0x1f9   :  { %v1388_v18 = vmax.f32 %v1274_v13, 0.0  ;;  %v1269_v19 = vadd.f32 %v3474_v16, %v1268_v15  ;;  %v1456_v20 = vmul.f32 %v3480_v12, %v1385_v11  ;;  %v1619_v30 = vsel %vm759_vm1, %v1457_v21, 0.0 }
 0x1fa   :  { %v2718_v22 = vpop.f32.mrf.mxu1  ;;  %1614 = vadd.xlane.f32.xlu1 %v1613_v17 }
 0x1fb   :  { %v1387_v23 = vmax.f32 %v1269_v19, 0.0  ;;  %v1284_v24 = vadd.f32 %v2718_v22, %v3474_v16  ;;  %v1616_v25 = vsel %vm759_vm1, %v1456_v20, 0.0  ;;  %v1459_v27 = vmul.f32 %v3480_v12, %v1388_v18 }
 0x1fc   :  { %v1278_v26 = vpop.f32.mrf.mxu1  ;;  %1617 = vadd.xlane.f32.xlu0 %v1616_v25 }
 0x1fd   :  { %v1390_v28 = vmax.f32 %v1284_v24, 0.0  ;;  %v1279_v29 = vadd.f32 %v3474_v16, %v1278_v26  ;;  %v1458_v31 = vmul.f32 %v3480_v12, %v1387_v23  ;;  %v1625_v37 = vsel %vm759_vm1, %v1459_v27, 0.0 }
 0x1fe   :  { %v2721_v32 = vpop.f32.mrf.mxu1  ;;  %1620 = vadd.xlane.f32.xlu1 %v1619_v30  ;;  %v3676_v26 = vstv %s4004_s6 }
 0x1ff   :  { %v1389_v33 = vmax.f32 %v1279_v29, 0.0  ;;  %v1294_v34 = vadd.f32 %v2721_v32, %v3474_v16  ;;  %v1622_v35 = vsel %vm759_vm1, %v1458_v31, 0.0  ;;  %v1461_v41 = vmul.f32 %v3480_v12, %v1390_v28 }
 0x200   :  { %v1288_v36 = vpop.f32.mrf.mxu1  ;;  %1623 = vadd.xlane.f32.xlu0 %v1622_v35 }
 0x201   :  { %v1392_v38 = vmax.f32 %v1294_v34, 0.0  ;;  %v1289_v39 = vadd.f32 %v3474_v16, %v1288_v36  ;;  %v1460_v40 = vmul.f32 %v3480_v12, %v1389_v33  ;;  %v1631_v50 = vsel %vm759_vm1, %v1461_v41, 0.0 }
 0x202   :  { %v2724_v42 = vpop.f32.mrf.mxu1  ;;  %1626 = vadd.xlane.f32.xlu1 %v1625_v37 }
 0x203   :  { %v1391_v43 = vmax.f32 %v1289_v39, 0.0  ;;  %v1304_v44 = vadd.f32 %v2724_v42, %v3474_v16  ;;  %v1628_v45 = vsel %vm759_vm1, %v1460_v40, 0.0  ;;  %v1463_v47 = vmul.f32 %v3480_v12, %v1392_v38 }
 0x204   :  { %v1298_v46 = vpop.f32.mrf.mxu1  ;;  %1629 = vadd.xlane.f32.xlu0 %v1628_v45 }
 0x205   :  { %v1394_v48 = vmax.f32 %v1304_v44, 0.0  ;;  %v1299_v49 = vadd.f32 %v3474_v16, %v1298_v46  ;;  %v1462_v51 = vmul.f32 %v3480_v12, %v1391_v43  ;;  %v1637_v57 = vsel %vm759_vm1, %v1463_v47, 0.0 }
 0x206   :  { %v2727_v52 = vpop.f32.mrf.mxu1  ;;  %1632 = vadd.xlane.f32.xlu1 %v1631_v50 }
 0x207   :  { %v1393_v53 = vmax.f32 %v1299_v49, 0.0  ;;  %v1314_v54 = vadd.f32 %v2727_v52, %v3474_v16  ;;  %v1634_v55 = vsel %vm759_vm1, %v1462_v51, 0.0  ;;  %v1465_v61 = vmul.f32 %v3480_v12, %v1394_v48 }
 0x208   :  { %v1308_v56 = vpop.f32.mrf.mxu1  ;;  %1635 = vadd.xlane.f32.xlu0 %v1634_v55 }
 0x209   :  { %v1396_v58 = vmax.f32 %v1314_v54, 0.0  ;;  %v1309_v59 = vadd.f32 %v3474_v16, %v1308_v56  ;;  %v1464_v60 = vmul.f32 %v3480_v12, %v1393_v53  ;;  %v1643_v6 = vsel %vm759_vm1, %v1465_v61, 0.0 }
 0x20a   :  { %v2730_v62 = vpop.f32.mrf.mxu1  ;;  %1638 = vadd.xlane.f32.xlu1 %v1637_v57 }
 0x20b   :  { %v1395_v63 = vmax.f32 %v1309_v59, 0.0  ;;  %v1324_v0 = vadd.f32 %v2730_v62, %v3474_v16  ;;  %v1640_v1 = vsel %vm759_vm1, %v1464_v60, 0.0  ;;  %v1467_v3 = vmul.f32 %v3480_v12, %v1396_v58 }
 0x20c   :  { %v1318_v2 = vpop.f32.mrf.mxu1  ;;  %1641 = vadd.xlane.f32.xlu0 %v1640_v1 }
 0x20d   :  { %v1398_v4 = vmax.f32 %v1324_v0, 0.0  ;;  %v1319_v5 = vadd.f32 %v3474_v16, %v1318_v2  ;;  %v1466_v7 = vmul.f32 %v3480_v12, %v1395_v63  ;;  %v1649_v14 = vsel %vm759_vm1, %v1467_v3, 0.0 }
 0x20e   :  { %v2733_v8 = vpop.f32.mrf.mxu1  ;;  %1644 = vadd.xlane.f32.xlu1 %v1643_v6 }
 0x20f   :  { %v1397_v9 = vmax.f32 %v1319_v5, 0.0  ;;  %v1334_v10 = vadd.f32 %v2733_v8, %v3474_v16  ;;  %v1646_v11 = vsel %vm759_vm1, %v1466_v7, 0.0  ;;  %v1469_v19 = vmul.f32 %v3480_v12, %v1398_v4 }
 0x210   :  { %v1328_v13 = vpop.f32.mrf.mxu1  ;;  %1647 = vadd.xlane.f32.xlu0 %v1646_v11 }
 0x211   :  { %v1400_v15 = vmax.f32 %v1334_v10, 0.0  ;;  %v1329_v17 = vadd.f32 %v3474_v16, %v1328_v13  ;;  %v1468_v18 = vmul.f32 %v3480_v12, %v1397_v9  ;;  %v1655_v22 = vsel %vm759_vm1, %v1469_v19, 0.0 }
 0x212   :  { %1650 = vadd.xlane.f32.xlu1 %v1649_v14 }
 0x213   :  { %v1399_v20 = vmax.f32 %v1329_v17, 0.0  ;;  %v1652_v21 = vsel %vm759_vm1, %v1468_v18, 0.0  ;;  %v1471_v24 = vmul.f32 %v3480_v12, %v1400_v15 }
 0x214   :  { %1653 = vadd.xlane.f32.xlu0 %v1652_v21 }
 0x215   :  { %v1470_v23 = vmul.f32 %v3480_v12, %v1399_v20  ;;  %v1661_v16 = vsel %vm759_vm1, %v1471_v24, 0.0 }
 0x216   :  { %1656 = vadd.xlane.f32.xlu1 %v1655_v22 }
 0x217   :  { %v1658_v25 = vsel %vm759_vm1, %v1470_v23, 0.0 }
 0x218   :  { %1659 = vadd.xlane.f32.xlu0 %v1658_v25 }
 0x21a   :  { %1662 = vadd.xlane.f32.xlu1 %v1661_v16 }
 0x223   :  { %v1477_v27 = vpop.xlane.xlu0 %1476 }
 0x224   :  { %v1667_v28 = vadd.f32 %v3676_v26, %v1477_v27 }
 0x226   :  { %v2315_v29 = vmul.f32 -1.442695, %v1667_v28 }
 0x227   :  { %v1483_v30 = vpop.xlane.xlu1 %1482  ;;  %v1474_v31 = vpop.xlane.xlu0 %1473 }
 0x228   :  { %2750 = vpow2.f32 %v2315_v29  ;;  %v1669_v12 = vadd.f32 %v3676_v26, %v1483_v30  ;;  %v1666_v32 = vadd.f32 %v3676_v26, %v1474_v31 }
 0x22a   :  { %v2317_v33 = vmul.f32 -1.442695, %v1669_v12  ;;  %v2314_v34 = vmul.f32 -1.442695, %v1666_v32 }
 0x22b   :  { %v1480_v35 = vpop.xlane.xlu1 %1479 }
 0x22c   :  { %2752 = vpow2.f32 %v2317_v33  ;;  %v1668_v36 = vadd.f32 %v3676_v26, %v1480_v35 }
 0x22d   :  { %2754 = vpow2.f32 %v2314_v34  ;;  %v1486_v37 = vpop.xlane.xlu0 %1485 }
 0x22e   :  { %v2316_v38 = vmul.f32 -1.442695, %v1668_v36  ;;  %v1670_v39 = vadd.f32 %v3676_v26, %v1486_v37 }
 0x22f   :  { %v1489_v40 = vpop.xlane.xlu1 %1488 }
 0x230   :  { %2756 = vpow2.f32 %v2316_v38  ;;  %v2318_v41 = vmul.f32 -1.442695, %v1670_v39  ;;  %v1671_v42 = vadd.f32 %v3676_v26, %v1489_v40 }
 0x231   :  { %v1492_v43 = vpop.xlane.xlu0 %1491 }
 0x232   :  { %2758 = vpow2.f32 %v2318_v41  ;;  %v2319_v44 = vmul.f32 -1.442695, %v1671_v42  ;;  %v1672_v45 = vadd.f32 %v3676_v26, %v1492_v43 }
 0x233   :  { %v1495_v46 = vpop.xlane.xlu1 %1494 }
 0x234   :  { %2760 = vpow2.f32 %v2319_v44  ;;  %v2320_v47 = vmul.f32 -1.442695, %v1672_v45  ;;  %v1673_v48 = vadd.f32 %v3676_v26, %v1495_v46 }
 0x235   :  { %v2751_v49 = vpop.eup %2750  ;;  %v1498_v50 = vpop.xlane.xlu0 %1497 }
 0x236   :  { %v1923_v51 = vadd.f32 1.0, %v2751_v49  ;;  %2762 = vpow2.f32 %v2320_v47  ;;  %v2321_v52 = vmul.f32 -1.442695, %v1673_v48  ;;  %v1674_v53 = vadd.f32 %v3676_v26, %v1498_v50 }
 0x237   :  { %v1501_v54 = vpop.xlane.xlu1 %1500 }
 0x238   :  { %2764 = vrcp.f32 %v1923_v51  ;;  %v2322_v55 = vmul.f32 -1.442695, %v1674_v53  ;;  %v1675_v56 = vadd.f32 %v3676_v26, %v1501_v54 }
 0x239   :  { %v2753_v57 = vpop.eup %2752  ;;  %2766 = vpow2.f32 %v2321_v52  ;;  %v1504_v58 = vpop.xlane.xlu0 %1503 }
 0x23a   :  { %v2755_v59 = vpop.eup %2754  ;;  %v1925_v60 = vadd.f32 1.0, %v2753_v57  ;;  %2768 = vpow2.f32 %v2322_v55  ;;  %v2323_v61 = vmul.f32 -1.442695, %v1675_v56  ;;  %v1676_v62 = vadd.f32 %v3676_v26, %v1504_v58 }
 0x23b   :  { %v1922_v63 = vadd.f32 1.0, %v2755_v59  ;;  %v1507_v0 = vpop.xlane.xlu1 %1506 }
 0x23c   :  { %2770 = vrcp.f32 %v1925_v60  ;;  %v2324_v1 = vmul.f32 -1.442695, %v1676_v62  ;;  %v1677_v2 = vadd.f32 %v3676_v26, %v1507_v0 }
 0x23d   :  { %v2757_v3 = vpop.eup %2756  ;;  %2772 = vrcp.f32 %v1922_v63  ;;  %v1510_v4 = vpop.xlane.xlu0 %1509 }
 0x23e   :  { %v1924_v5 = vadd.f32 1.0, %v2757_v3  ;;  %2774 = vpow2.f32 %v2323_v61  ;;  %v2325_v6 = vmul.f32 -1.442695, %v1677_v2  ;;  %v1678_v7 = vadd.f32 %v3676_v26, %v1510_v4 }
 0x23f   :  { %v2759_v8 = vpop.eup %2758  ;;  %2776 = vpow2.f32 %v2324_v1  ;;  %v1513_v9 = vpop.xlane.xlu1 %1512 }
 0x240   :  { %2778 = vrcp.f32 %v1924_v5  ;;  %v1926_v10 = vadd.f32 1.0, %v2759_v8  ;;  %v2326_v11 = vmul.f32 -1.442695, %v1678_v7  ;;  %v1679_v13 = vadd.f32 %v3676_v26, %v1513_v9 }
 0x241   :  { %v2761_v14 = vpop.eup %2760  ;;  %2780 = vpow2.f32 %v2325_v6  ;;  %v1516_v15 = vpop.xlane.xlu0 %1515 }
 0x242   :  { %2782 = vrcp.f32 %v1926_v10  ;;  %v1927_v17 = vadd.f32 1.0, %v2761_v14  ;;  %v2327_v18 = vmul.f32 -1.442695, %v1679_v13  ;;  %v1680_v19 = vadd.f32 %v3676_v26, %v1516_v15 }
 0x243   :  { %v2763_v20 = vpop.eup %2762  ;;  %2784 = vpow2.f32 %v2326_v11  ;;  %v1519_v21 = vpop.xlane.xlu1 %1518 }
 0x244   :  { %2786 = vrcp.f32 %v1927_v17  ;;  %v1928_v22 = vadd.f32 1.0, %v2763_v20  ;;  %v2328_v23 = vmul.f32 -1.442695, %v1680_v19  ;;  %v1681_v24 = vadd.f32 %v3676_v26, %v1519_v21 }
 0x245   :  { %v2765_v25 = vpop.eup %2764  ;;  %2788 = vpow2.f32 %v2327_v18  ;;  %v1522_v16 = vpop.xlane.xlu0 %1521 }
 0x246   :  { %v2767_v27 = vpop.eup %2766  ;;  %2116 = vst.msk [vmem:[%s4005_s7 + $0x8] sm:$0xff] %vm2114_vm2, %v2765_v25  ;;  %2790 = vrcp.f32 %v1928_v22  ;;  %v2329_v28 = vmul.f32 -1.442695, %v1681_v24  ;;  %v1682_v29 = vadd.f32 %v3676_v26, %v1522_v16 }
 0x247   :  { %v2769_v30 = vpop.eup %2768  ;;  %v1929_v31 = vadd.f32 1.0, %v2767_v27  ;;  %2792 = vpow2.f32 %v2328_v23  ;;  %v1525_v12 = vpop.xlane.xlu1 %1524 }
 0x248   :  { %v1930_v32 = vadd.f32 1.0, %v2769_v30  ;;  %2794 = vpow2.f32 %v2329_v28  ;;  %v2330_v33 = vmul.f32 -1.442695, %v1682_v29  ;;  %v1683_v34 = vadd.f32 %v3676_v26, %v1525_v12 }
 0x249   :  { %v2771_v35 = vpop.eup %2770  ;;  %2796 = vrcp.f32 %v1929_v31  ;;  %v1528_v36 = vpop.xlane.xlu0 %1527 }
 0x24a   :  { %v2773_v37 = vpop.eup %2772  ;;  %2118 = vst.msk [vmem:[%s4005_s7 + $0x18] sm:$0xff] %vm2114_vm2, %v2771_v35  ;;  %2798 = vrcp.f32 %v1930_v32  ;;  %v2331_v38 = vmul.f32 -1.442695, %v1683_v34  ;;  %v1684_v39 = vadd.f32 %v3676_v26, %v1528_v36 }
 0x24b   :  { %v2775_v40 = vpop.eup %2774  ;;  %2115 = vst.msk [vmem:[%s4005_s7] sm:$0xff] %vm2114_vm2, %v2773_v37  ;;  %2800 = vpow2.f32 %v2330_v33  ;;  %v1531_v41 = vpop.xlane.xlu1 %1530 }
 0x24c   :  { %v2777_v42 = vpop.eup %2776  ;;  %v1931_v43 = vadd.f32 1.0, %v2775_v40  ;;  %2802 = vpow2.f32 %v2331_v38  ;;  %v2332_v44 = vmul.f32 -1.442695, %v1684_v39  ;;  %v1685_v45 = vadd.f32 %v3676_v26, %v1531_v41 }
 0x24d   :  { %v2779_v46 = vpop.eup %2778  ;;  %v1932_v47 = vadd.f32 1.0, %v2777_v42  ;;  %v1534_v48 = vpop.xlane.xlu0 %1533 }
 0x24e   :  { %v2781_v49 = vpop.eup %2780  ;;  %2117 = vst.msk [vmem:[%s4005_s7 + $0x10] sm:$0xff] %vm2114_vm2, %v2779_v46  ;;  %2804 = vrcp.f32 %v1931_v43  ;;  %v2333_v50 = vmul.f32 -1.442695, %v1685_v45  ;;  %v1686_v51 = vadd.f32 %v3676_v26, %v1534_v48 }
 0x24f   :  { %v2783_v52 = vpop.eup %2782  ;;  %2806 = vrcp.f32 %v1932_v47  ;;  %v1933_v53 = vadd.f32 1.0, %v2781_v49  ;;  %v1537_v54 = vpop.xlane.xlu1 %1536 }
 0x250   :  { %v2785_v55 = vpop.eup %2784  ;;  %2119 = vst.msk [vmem:[%s4005_s7 + $0x20] sm:$0xff] %vm2114_vm2, %v2783_v52  ;;  %2808 = vpow2.f32 %v2332_v44  ;;  %v2334_v56 = vmul.f32 -1.442695, %v1686_v51  ;;  %v1687_v57 = vadd.f32 %v3676_v26, %v1537_v54 }
 0x251   :  { %v2787_v58 = vpop.eup %2786  ;;  %2810 = vrcp.f32 %v1933_v53  ;;  %v1934_v59 = vadd.f32 1.0, %v2785_v55  ;;  %v1540_v60 = vpop.xlane.xlu0 %1539 }
 0x252   :  { %v2789_v61 = vpop.eup %2788  ;;  %2120 = vst.msk [vmem:[%s4005_s7 + $0x28] sm:$0xff] %vm2114_vm2, %v2787_v58  ;;  %2812 = vpow2.f32 %v2333_v50  ;;  %v2335_v62 = vmul.f32 -1.442695, %v1687_v57  ;;  %v1688_v63 = vadd.f32 %v3676_v26, %v1540_v60 }
 0x253   :  { %v2791_v0 = vpop.eup %2790  ;;  %2814 = vrcp.f32 %v1934_v59  ;;  %v1935_v1 = vadd.f32 1.0, %v2789_v61  ;;  %v1543_v2 = vpop.xlane.xlu1 %1542 }
 0x254   :  { %v2793_v3 = vpop.eup %2792  ;;  %2121 = vst.msk [vmem:[%s4005_s7 + $0x30] sm:$0xff] %vm2114_vm2, %v2791_v0  ;;  %2816 = vpow2.f32 %v2334_v56  ;;  %v1689_v4 = vadd.f32 %v3676_v26, %v1543_v2  ;;  %v2336_v7 = vmul.f32 -1.442695, %v1688_v63 }
 0x255   :  { %v2795_v5 = vpop.eup %2794  ;;  %2818 = vrcp.f32 %v1935_v1  ;;  %v1936_v6 = vadd.f32 1.0, %v2793_v3  ;;  %v1546_v8 = vpop.xlane.xlu0 %1545 }
 0x256   :  { %v2797_v9 = vpop.eup %2796  ;;  %v1937_v10 = vadd.f32 1.0, %v2795_v5  ;;  %2820 = vpow2.f32 %v2335_v62  ;;  %v2337_v11 = vmul.f32 -1.442695, %v1689_v4  ;;  %v1690_v13 = vadd.f32 %v3676_v26, %v1546_v8 }
 0x257   :  { %v2799_v14 = vpop.eup %2798  ;;  %2122 = vst.msk [vmem:[%s4005_s7 + $0x38] sm:$0xff] %vm2114_vm2, %v2797_v9  ;;  %2822 = vrcp.f32 %v1936_v6  ;;  %v1549_v15 = vpop.xlane.xlu1 %1548 }
 0x258   :  { %v2801_v17 = vpop.eup %2800  ;;  %2123 = vst.msk [vmem:[%s4005_s7 + $0x40] sm:$0xff] %vm2114_vm2, %v2799_v14  ;;  %2824 = vrcp.f32 %v1937_v10  ;;  %v1691_v18 = vadd.f32 %v3676_v26, %v1549_v15  ;;  %v2338_v21 = vmul.f32 -1.442695, %v1690_v13 }
 0x259   :  { %v2803_v19 = vpop.eup %2802  ;;  %v1938_v20 = vadd.f32 1.0, %v2801_v17  ;;  %2826 = vpow2.f32 %v2336_v7  ;;  %v1552_v22 = vpop.xlane.xlu0 %1551 }
 0x25a   :  { %v1939_v23 = vadd.f32 1.0, %v2803_v19  ;;  %2828 = vpow2.f32 %v2337_v11  ;;  %v2339_v24 = vmul.f32 -1.442695, %v1691_v18  ;;  %v1692_v25 = vadd.f32 %v3676_v26, %v1552_v22 }
 0x25b   :  { %v2805_v16 = vpop.eup %2804  ;;  %2830 = vrcp.f32 %v1938_v20  ;;  %v1555_v27 = vpop.xlane.xlu1 %1554 }
 0x25c   :  { %v2807_v28 = vpop.eup %2806  ;;  %2124 = vst.msk [vmem:[%s4005_s7 + $0x48] sm:$0xff] %vm2114_vm2, %v2805_v16  ;;  %2832 = vrcp.f32 %v1939_v23  ;;  %v2340_v29 = vmul.f32 -1.442695, %v1692_v25  ;;  %v1693_v30 = vadd.f32 %v3676_v26, %v1555_v27 }
 0x25d   :  { %v2809_v31 = vpop.eup %2808  ;;  %2125 = vst.msk [vmem:[%s4005_s7 + $0x50] sm:$0xff] %vm2114_vm2, %v2807_v28  ;;  %2834 = vpow2.f32 %v2338_v21  ;;  %v1558_v12 = vpop.xlane.xlu0 %1557 }
 0x25e   :  { %v2811_v32 = vpop.eup %2810  ;;  %v1940_v33 = vadd.f32 1.0, %v2809_v31  ;;  %2836 = vpow2.f32 %v2339_v24  ;;  %v2341_v34 = vmul.f32 -1.442695, %v1693_v30  ;;  %v1694_v35 = vadd.f32 %v3676_v26, %v1558_v12 }
 0x25f   :  { %v2813_v36 = vpop.eup %2812  ;;  %2126 = vst.msk [vmem:[%s4005_s7 + $0x58] sm:$0xff] %vm2114_vm2, %v2811_v32  ;;  %2838 = vpow2.f32 %v2340_v29  ;;  %v1561_v37 = vpop.xlane.xlu1 %1560 }
 0x260   :  { %v2815_v38 = vpop.eup %2814  ;;  %2840 = vrcp.f32 %v1940_v33  ;;  %v1941_v39 = vadd.f32 1.0, %v2813_v36  ;;  %v2342_v40 = vmul.f32 -1.442695, %v1694_v35  ;;  %v1695_v41 = vadd.f32 %v3676_v26, %v1561_v37 }
 0x261   :  { %v2817_v42 = vpop.eup %2816  ;;  %2127 = vst.msk [vmem:[%s4005_s7 + $0x60] sm:$0xff] %vm2114_vm2, %v2815_v38  ;;  %2842 = vpow2.f32 %v2341_v34  ;;  %v1564_v43 = vpop.xlane.xlu0 %1563 }
 0x262   :  { %v2819_v44 = vpop.eup %2818  ;;  %2844 = vrcp.f32 %v1941_v39  ;;  %v1942_v45 = vadd.f32 1.0, %v2817_v42  ;;  %v2343_v46 = vmul.f32 -1.442695, %v1695_v41  ;;  %v1696_v47 = vadd.f32 %v3676_v26, %v1564_v43 }
 0x263   :  { %v2821_v48 = vpop.eup %2820  ;;  %2128 = vst.msk [vmem:[%s4005_s7 + $0x68] sm:$0xff] %vm2114_vm2, %v2819_v44  ;;  %2846 = vpow2.f32 %v2342_v40  ;;  %v1567_v49 = vpop.xlane.xlu1 %1566 }
 0x264   :  { %v2823_v50 = vpop.eup %2822  ;;  %2848 = vrcp.f32 %v1942_v45  ;;  %v1943_v51 = vadd.f32 1.0, %v2821_v48  ;;  %v2344_v52 = vmul.f32 -1.442695, %v1696_v47  ;;  %v1697_v53 = vadd.f32 %v3676_v26, %v1567_v49 }
 0x265   :  { %v2825_v54 = vpop.eup %2824  ;;  %2129 = vst.msk [vmem:[%s4005_s7 + $0x70] sm:$0xff] %vm2114_vm2, %v2823_v50  ;;  %2850 = vpow2.f32 %v2343_v46  ;;  %v1570_v55 = vpop.xlane.xlu0 %1569 }
 0x266   :  { %v2827_v56 = vpop.eup %2826  ;;  %2130 = vst.msk [vmem:[%s4005_s7 + $0x78] sm:$0xff] %vm2114_vm2, %v2825_v54  ;;  %2852 = vrcp.f32 %v1943_v51  ;;  %v2345_v57 = vmul.f32 -1.442695, %v1697_v53  ;;  %v1698_v58 = vadd.f32 %v3676_v26, %v1570_v55 }
 0x267   :  { %v2829_v59 = vpop.eup %2828  ;;  %v1944_v60 = vadd.f32 1.0, %v2827_v56  ;;  %2854 = vpow2.f32 %v2344_v52  ;;  %v1573_v61 = vpop.xlane.xlu1 %1572 }
 0x268   :  { %v2831_v62 = vpop.eup %2830  ;;  %v1945_v63 = vadd.f32 1.0, %v2829_v59  ;;  %2856 = vpow2.f32 %v2345_v57  ;;  %v2346_v0 = vmul.f32 -1.442695, %v1698_v58  ;;  %v1699_v1 = vadd.f32 %v3676_v26, %v1573_v61 }
 0x269   :  { %v2833_v2 = vpop.eup %2832  ;;  %2131 = vst.msk [vmem:[%s4005_s7 + $0x80] sm:$0xff] %vm2114_vm2, %v2831_v62  ;;  %2858 = vrcp.f32 %v1944_v60  ;;  %v1576_v3 = vpop.xlane.xlu0 %1575 }
 0x26a   :  { %v2835_v4 = vpop.eup %2834  ;;  %2132 = vst.msk [vmem:[%s4005_s7 + $0x88] sm:$0xff] %vm2114_vm2, %v2833_v2  ;;  %2860 = vrcp.f32 %v1945_v63  ;;  %v2347_v5 = vmul.f32 -1.442695, %v1699_v1  ;;  %v1700_v6 = vadd.f32 %v3676_v26, %v1576_v3 }
 0x26b   :  { %v2837_v7 = vpop.eup %2836  ;;  %v1946_v8 = vadd.f32 1.0, %v2835_v4  ;;  %2862 = vpow2.f32 %v2346_v0  ;;  %v1579_v9 = vpop.xlane.xlu1 %1578 }
 0x26c   :  { %v2839_v10 = vpop.eup %2838  ;;  %v1947_v11 = vadd.f32 1.0, %v2837_v7  ;;  %2864 = vpow2.f32 %v2347_v5  ;;  %v2348_v13 = vmul.f32 -1.442695, %v1700_v6  ;;  %v1701_v14 = vadd.f32 %v3676_v26, %v1579_v9 }
 0x26d   :  { %v2841_v15 = vpop.eup %2840  ;;  %2866 = vrcp.f32 %v1946_v8  ;;  %v1948_v17 = vadd.f32 1.0, %v2839_v10  ;;  %v1582_v18 = vpop.xlane.xlu0 %1581 }
 0x26e   :  { %v2843_v19 = vpop.eup %2842  ;;  %2133 = vst.msk [vmem:[%s4005_s7 + $0x90] sm:$0xff] %vm2114_vm2, %v2841_v15  ;;  %2868 = vrcp.f32 %v1947_v11  ;;  %v2349_v20 = vmul.f32 -1.442695, %v1701_v14  ;;  %v1702_v21 = vadd.f32 %v3676_v26, %v1582_v18 }
 0x26f   :  { %v2845_v22 = vpop.eup %2844  ;;  %2870 = vrcp.f32 %v1948_v17  ;;  %v1949_v23 = vadd.f32 1.0, %v2843_v19  ;;  %v1585_v24 = vpop.xlane.xlu1 %1584 }
 0x270   :  { %v2847_v25 = vpop.eup %2846  ;;  %2134 = vst.msk [vmem:[%s4005_s7 + $0x98] sm:$0xff] %vm2114_vm2, %v2845_v22  ;;  %2872 = vpow2.f32 %v2348_v13  ;;  %v2350_v16 = vmul.f32 -1.442695, %v1702_v21  ;;  %v1703_v27 = vadd.f32 %v3676_v26, %v1585_v24 }
 0x271   :  { %v2849_v28 = vpop.eup %2848  ;;  %2874 = vrcp.f32 %v1949_v23  ;;  %v1950_v29 = vadd.f32 1.0, %v2847_v25  ;;  %v1588_v30 = vpop.xlane.xlu0 %1587 }
 0x272   :  { %v2851_v31 = vpop.eup %2850  ;;  %2135 = vst.msk [vmem:[%s4005_s7 + $0xa0] sm:$0xff] %vm2114_vm2, %v2849_v28  ;;  %2876 = vpow2.f32 %v2349_v20  ;;  %v2351_v12 = vmul.f32 -1.442695, %v1703_v27  ;;  %v1704_v32 = vadd.f32 %v3676_v26, %v1588_v30 }
 0x273   :  { %v2853_v33 = vpop.eup %2852  ;;  %2878 = vrcp.f32 %v1950_v29  ;;  %v1951_v34 = vadd.f32 1.0, %v2851_v31  ;;  %v1591_v35 = vpop.xlane.xlu1 %1590 }
 0x274   :  { %v2855_v36 = vpop.eup %2854  ;;  %2136 = vst.msk [vmem:[%s4005_s7 + $0xa8] sm:$0xff] %vm2114_vm2, %v2853_v33  ;;  %2880 = vpow2.f32 %v2350_v16  ;;  %v1705_v37 = vadd.f32 %v3676_v26, %v1591_v35  ;;  %v2352_v40 = vmul.f32 -1.442695, %v1704_v32 }
 0x275   :  { %v2857_v38 = vpop.eup %2856  ;;  %2882 = vrcp.f32 %v1951_v34  ;;  %v1952_v39 = vadd.f32 1.0, %v2855_v36  ;;  %v1594_v41 = vpop.xlane.xlu0 %1593 }
 0x276   :  { %v2859_v42 = vpop.eup %2858  ;;  %v1953_v43 = vadd.f32 1.0, %v2857_v38  ;;  %2884 = vpow2.f32 %v2351_v12  ;;  %v2353_v44 = vmul.f32 -1.442695, %v1705_v37  ;;  %v1706_v45 = vadd.f32 %v3676_v26, %v1594_v41 }
 0x277   :  { %v2861_v46 = vpop.eup %2860  ;;  %2137 = vst.msk [vmem:[%s4005_s7 + $0xb0] sm:$0xff] %vm2114_vm2, %v2859_v42  ;;  %2886 = vrcp.f32 %v1952_v39  ;;  %v1597_v47 = vpop.xlane.xlu1 %1596 }
 0x278   :  { %v2863_v48 = vpop.eup %2862  ;;  %2138 = vst.msk [vmem:[%s4005_s7 + $0xb8] sm:$0xff] %vm2114_vm2, %v2861_v46  ;;  %2888 = vrcp.f32 %v1953_v43  ;;  %v1707_v49 = vadd.f32 %v3676_v26, %v1597_v47  ;;  %v2354_v52 = vmul.f32 -1.442695, %v1706_v45 }
 0x279   :  { %v2865_v50 = vpop.eup %2864  ;;  %v1954_v51 = vadd.f32 1.0, %v2863_v48  ;;  %2890 = vpow2.f32 %v2352_v40  ;;  %v1600_v53 = vpop.xlane.xlu0 %1599 }
 0x27a   :  { %v2867_v54 = vpop.eup %2866  ;;  %v1955_v55 = vadd.f32 1.0, %v2865_v50  ;;  %2892 = vpow2.f32 %v2353_v44  ;;  %v2355_v56 = vmul.f32 -1.442695, %v1707_v49  ;;  %v1708_v57 = vadd.f32 %v3676_v26, %v1600_v53 }
 0x27b   :  { %v2869_v58 = vpop.eup %2868  ;;  %2139 = vst.msk [vmem:[%s4005_s7 + $0xc0] sm:$0xff] %vm2114_vm2, %v2867_v54  ;;  %2894 = vrcp.f32 %v1954_v51  ;;  %v1603_v59 = vpop.xlane.xlu1 %1602 }
 0x27c   :  { %v2871_v60 = vpop.eup %2870  ;;  %2140 = vst.msk [vmem:[%s4005_s7 + $0xc8] sm:$0xff] %vm2114_vm2, %v2869_v58  ;;  %2896 = vrcp.f32 %v1955_v55  ;;  %v2356_v61 = vmul.f32 -1.442695, %v1708_v57  ;;  %v1709_v62 = vadd.f32 %v3676_v26, %v1603_v59 }
 0x27d   :  { %v2873_v63 = vpop.eup %2872  ;;  %2141 = vst.msk [vmem:[%s4005_s7 + $0xd0] sm:$0xff] %vm2114_vm2, %v2871_v60  ;;  %2898 = vpow2.f32 %v2354_v52  ;;  %v1606_v0 = vpop.xlane.xlu0 %1605 }
 0x27e   :  { %v2875_v1 = vpop.eup %2874  ;;  %v1956_v2 = vadd.f32 1.0, %v2873_v63  ;;  %2900 = vpow2.f32 %v2355_v56  ;;  %v2357_v3 = vmul.f32 -1.442695, %v1709_v62  ;;  %v1710_v4 = vadd.f32 %v3676_v26, %v1606_v0 }
 0x27f   :  { %v2877_v5 = vpop.eup %2876  ;;  %2142 = vst.msk [vmem:[%s4005_s7 + $0xd8] sm:$0xff] %vm2114_vm2, %v2875_v1  ;;  %2902 = vpow2.f32 %v2356_v61  ;;  %v1609_v6 = vpop.xlane.xlu1 %1608 }
 0x280   :  { %v2879_v7 = vpop.eup %2878  ;;  %2904 = vrcp.f32 %v1956_v2  ;;  %v1957_v8 = vadd.f32 1.0, %v2877_v5  ;;  %v2358_v9 = vmul.f32 -1.442695, %v1710_v4  ;;  %v1711_v10 = vadd.f32 %v3676_v26, %v1609_v6 }
 0x281   :  { %v2881_v11 = vpop.eup %2880  ;;  %2143 = vst.msk [vmem:[%s4005_s7 + $0xe0] sm:$0xff] %vm2114_vm2, %v2879_v7  ;;  %2906 = vpow2.f32 %v2357_v3  ;;  %v1612_v13 = vpop.xlane.xlu0 %1611 }
 0x282   :  { %v2883_v14 = vpop.eup %2882  ;;  %2908 = vrcp.f32 %v1957_v8  ;;  %v1958_v15 = vadd.f32 1.0, %v2881_v11  ;;  %v2359_v17 = vmul.f32 -1.442695, %v1711_v10  ;;  %v1712_v18 = vadd.f32 %v3676_v26, %v1612_v13 }
 0x283   :  { %v2885_v19 = vpop.eup %2884  ;;  %2144 = vst.msk [vmem:[%s4005_s7 + $0xe8] sm:$0xff] %vm2114_vm2, %v2883_v14  ;;  %2910 = vpow2.f32 %v2358_v9  ;;  %v1615_v20 = vpop.xlane.xlu1 %1614 }
 0x284   :  { %v2887_v21 = vpop.eup %2886  ;;  %2912 = vrcp.f32 %v1958_v15  ;;  %v1959_v22 = vadd.f32 1.0, %v2885_v19  ;;  %v2360_v23 = vmul.f32 -1.442695, %v1712_v18  ;;  %v1713_v24 = vadd.f32 %v3676_v26, %v1615_v20 }
 0x285   :  { %v2889_v25 = vpop.eup %2888  ;;  %2145 = vst.msk [vmem:[%s4005_s7 + $0xf0] sm:$0xff] %vm2114_vm2, %v2887_v21  ;;  %2914 = vpow2.f32 %v2359_v17  ;;  %v1618_v16 = vpop.xlane.xlu0 %1617 }
 0x286   :  { %v2891_v27 = vpop.eup %2890  ;;  %2146 = vst.msk [vmem:[%s4005_s7 + $0xf8] sm:$0xff] %vm2114_vm2, %v2889_v25  ;;  %2916 = vrcp.f32 %v1959_v22  ;;  %v2361_v28 = vmul.f32 -1.442695, %v1713_v24  ;;  %v1714_v29 = vadd.f32 %v3676_v26, %v1618_v16 }
 0x287   :  { %v2893_v30 = vpop.eup %2892  ;;  %v1960_v31 = vadd.f32 1.0, %v2891_v27  ;;  %2918 = vpow2.f32 %v2360_v23  ;;  %v1621_v12 = vpop.xlane.xlu1 %1620 }
 0x288   :  { %v2895_v32 = vpop.eup %2894  ;;  %v1961_v33 = vadd.f32 1.0, %v2893_v30  ;;  %2920 = vpow2.f32 %v2361_v28  ;;  %v2362_v34 = vmul.f32 -1.442695, %v1714_v29  ;;  %v1715_v35 = vadd.f32 %v3676_v26, %v1621_v12 }
 0x289   :  { %v2897_v36 = vpop.eup %2896  ;;  %2147 = vst.msk [vmem:[%s4005_s7 + $0x100] sm:$0xff] %vm2114_vm2, %v2895_v32  ;;  %2922 = vrcp.f32 %v1960_v31  ;;  %v1624_v37 = vpop.xlane.xlu0 %1623 }
 0x28a   :  { %v2899_v38 = vpop.eup %2898  ;;  %2148 = vst.msk [vmem:[%s4005_s7 + $0x108] sm:$0xff] %vm2114_vm2, %v2897_v36  ;;  %2924 = vrcp.f32 %v1961_v33  ;;  %v2363_v39 = vmul.f32 -1.442695, %v1715_v35  ;;  %v1716_v40 = vadd.f32 %v3676_v26, %v1624_v37 }
 0x28b   :  { %v2901_v41 = vpop.eup %2900  ;;  %v1962_v42 = vadd.f32 1.0, %v2899_v38  ;;  %2926 = vpow2.f32 %v2362_v34  ;;  %v1627_v43 = vpop.xlane.xlu1 %1626 }
 0x28c   :  { %v2903_v44 = vpop.eup %2902  ;;  %v1963_v45 = vadd.f32 1.0, %v2901_v41  ;;  %2928 = vpow2.f32 %v2363_v39  ;;  %v2364_v46 = vmul.f32 -1.442695, %v1716_v40  ;;  %v1717_v47 = vadd.f32 %v3676_v26, %v1627_v43 }
 0x28d   :  { %v2905_v48 = vpop.eup %2904  ;;  %2930 = vrcp.f32 %v1962_v42  ;;  %v1964_v49 = vadd.f32 1.0, %v2903_v44  ;;  %v1630_v50 = vpop.xlane.xlu0 %1629 }
 0x28e   :  { %v2907_v51 = vpop.eup %2906  ;;  %2149 = vst.msk [vmem:[%s4005_s7 + $0x110] sm:$0xff] %vm2114_vm2, %v2905_v48  ;;  %2932 = vrcp.f32 %v1963_v45  ;;  %v2365_v52 = vmul.f32 -1.442695, %v1717_v47  ;;  %v1718_v53 = vadd.f32 %v3676_v26, %v1630_v50 }
 0x28f   :  { %v2909_v54 = vpop.eup %2908  ;;  %2934 = vrcp.f32 %v1964_v49  ;;  %v1965_v55 = vadd.f32 1.0, %v2907_v51  ;;  %v1633_v56 = vpop.xlane.xlu1 %1632 }
 0x290   :  { %v2911_v57 = vpop.eup %2910  ;;  %2150 = vst.msk [vmem:[%s4005_s7 + $0x118] sm:$0xff] %vm2114_vm2, %v2909_v54  ;;  %2936 = vpow2.f32 %v2364_v46  ;;  %v2366_v58 = vmul.f32 -1.442695, %v1718_v53  ;;  %v1719_v59 = vadd.f32 %v3676_v26, %v1633_v56 }
 0x291   :  { %v2913_v60 = vpop.eup %2912  ;;  %2938 = vrcp.f32 %v1965_v55  ;;  %v1966_v61 = vadd.f32 1.0, %v2911_v57  ;;  %v1636_v62 = vpop.xlane.xlu0 %1635 }
 0x292   :  { %v2915_v63 = vpop.eup %2914  ;;  %2151 = vst.msk [vmem:[%s4005_s7 + $0x120] sm:$0xff] %vm2114_vm2, %v2913_v60  ;;  %2940 = vpow2.f32 %v2365_v52  ;;  %v2367_v0 = vmul.f32 -1.442695, %v1719_v59  ;;  %v1720_v1 = vadd.f32 %v3676_v26, %v1636_v62 }
 0x293   :  { %v2917_v2 = vpop.eup %2916  ;;  %2942 = vrcp.f32 %v1966_v61  ;;  %v1967_v3 = vadd.f32 1.0, %v2915_v63  ;;  %v1639_v4 = vpop.xlane.xlu1 %1638 }
 0x294   :  { %v2919_v5 = vpop.eup %2918  ;;  %2152 = vst.msk [vmem:[%s4005_s7 + $0x128] sm:$0xff] %vm2114_vm2, %v2917_v2  ;;  %2944 = vpow2.f32 %v2366_v58  ;;  %v1721_v6 = vadd.f32 %v3676_v26, %v1639_v4  ;;  %v2368_v9 = vmul.f32 -1.442695, %v1720_v1 }
 0x295   :  { %v2921_v7 = vpop.eup %2920  ;;  %2946 = vrcp.f32 %v1967_v3  ;;  %v1968_v8 = vadd.f32 1.0, %v2919_v5  ;;  %v1642_v10 = vpop.xlane.xlu0 %1641 }
 0x296   :  { %v2923_v11 = vpop.eup %2922  ;;  %v1969_v13 = vadd.f32 1.0, %v2921_v7  ;;  %2948 = vpow2.f32 %v2367_v0  ;;  %v2369_v14 = vmul.f32 -1.442695, %v1721_v6  ;;  %v1722_v15 = vadd.f32 %v3676_v26, %v1642_v10 }
 0x297   :  { %v2925_v17 = vpop.eup %2924  ;;  %2153 = vst.msk [vmem:[%s4005_s7 + $0x130] sm:$0xff] %vm2114_vm2, %v2923_v11  ;;  %2950 = vrcp.f32 %v1968_v8  ;;  %v1645_v18 = vpop.xlane.xlu1 %1644 }
 0x298   :  { %v2927_v19 = vpop.eup %2926  ;;  %2154 = vst.msk [vmem:[%s4005_s7 + $0x138] sm:$0xff] %vm2114_vm2, %v2925_v17  ;;  %2952 = vrcp.f32 %v1969_v13  ;;  %v1723_v20 = vadd.f32 %v3676_v26, %v1645_v18  ;;  %v2370_v23 = vmul.f32 -1.442695, %v1722_v15 }
 0x299   :  { %v2929_v21 = vpop.eup %2928  ;;  %v1970_v22 = vadd.f32 1.0, %v2927_v19  ;;  %2954 = vpow2.f32 %v2368_v9  ;;  %v1648_v24 = vpop.xlane.xlu0 %1647 }
 0x29a   :  { %v2931_v25 = vpop.eup %2930  ;;  %v1971_v16 = vadd.f32 1.0, %v2929_v21  ;;  %2956 = vpow2.f32 %v2369_v14  ;;  %v2371_v27 = vmul.f32 -1.442695, %v1723_v20  ;;  %v1724_v28 = vadd.f32 %v3676_v26, %v1648_v24 }
 0x29b   :  { %v2933_v29 = vpop.eup %2932  ;;  %2155 = vst.msk [vmem:[%s4005_s7 + $0x140] sm:$0xff] %vm2114_vm2, %v2931_v25  ;;  %2958 = vrcp.f32 %v1970_v22  ;;  %v1651_v30 = vpop.xlane.xlu1 %1650 }
 0x29c   :  { %v2935_v31 = vpop.eup %2934  ;;  %2156 = vst.msk [vmem:[%s4005_s7 + $0x148] sm:$0xff] %vm2114_vm2, %v2933_v29  ;;  %2960 = vrcp.f32 %v1971_v16  ;;  %v2372_v12 = vmul.f32 -1.442695, %v1724_v28  ;;  %v1725_v32 = vadd.f32 %v3676_v26, %v1651_v30 }
 0x29d   :  { %v2937_v33 = vpop.eup %2936  ;;  %2157 = vst.msk [vmem:[%s4005_s7 + $0x150] sm:$0xff] %vm2114_vm2, %v2935_v31  ;;  %2962 = vpow2.f32 %v2370_v23  ;;  %v1654_v34 = vpop.xlane.xlu0 %1653 }
 0x29e   :  { %v2939_v35 = vpop.eup %2938  ;;  %v1972_v36 = vadd.f32 1.0, %v2937_v33  ;;  %2964 = vpow2.f32 %v2371_v27  ;;  %v2373_v37 = vmul.f32 -1.442695, %v1725_v32  ;;  %v1726_v38 = vadd.f32 %v3676_v26, %v1654_v34 }
 0x29f   :  { %v2941_v39 = vpop.eup %2940  ;;  %2158 = vst.msk [vmem:[%s4005_s7 + $0x158] sm:$0xff] %vm2114_vm2, %v2939_v35  ;;  %2966 = vpow2.f32 %v2372_v12  ;;  %v1657_v40 = vpop.xlane.xlu1 %1656 }
 0x2a0   :  { %v2943_v41 = vpop.eup %2942  ;;  %2968 = vrcp.f32 %v1972_v36  ;;  %v1973_v42 = vadd.f32 1.0, %v2941_v39  ;;  %v2374_v43 = vmul.f32 -1.442695, %v1726_v38  ;;  %v1727_v44 = vadd.f32 %v3676_v26, %v1657_v40 }
 0x2a1   :  { %v2945_v45 = vpop.eup %2944  ;;  %2159 = vst.msk [vmem:[%s4005_s7 + $0x160] sm:$0xff] %vm2114_vm2, %v2943_v41  ;;  %2970 = vpow2.f32 %v2373_v37  ;;  %v1660_v46 = vpop.xlane.xlu0 %1659 }
 0x2a2   :  { %v2947_v47 = vpop.eup %2946  ;;  %2972 = vrcp.f32 %v1973_v42  ;;  %v1974_v48 = vadd.f32 1.0, %v2945_v45  ;;  %v2375_v49 = vmul.f32 -1.442695, %v1727_v44  ;;  %v1728_v50 = vadd.f32 %v3676_v26, %v1660_v46 }
 0x2a3   :  { %v2949_v51 = vpop.eup %2948  ;;  %2160 = vst.msk [vmem:[%s4005_s7 + $0x168] sm:$0xff] %vm2114_vm2, %v2947_v47  ;;  %2974 = vpow2.f32 %v2374_v43  ;;  %v1663_v52 = vpop.xlane.xlu1 %1662 }
 0x2a4   :  { %v2951_v53 = vpop.eup %2950  ;;  %2976 = vrcp.f32 %v1974_v48  ;;  %v1975_v54 = vadd.f32 1.0, %v2949_v51  ;;  %v2376_v55 = vmul.f32 -1.442695, %v1728_v50  ;;  %v1729_v56 = vadd.f32 %v3676_v26, %v1663_v52 }
 0x2a5   :  { %v2953_v57 = vpop.eup %2952  ;;  %2161 = vst.msk [vmem:[%s4005_s7 + $0x170] sm:$0xff] %vm2114_vm2, %v2951_v53  ;;  %2978 = vpow2.f32 %v2375_v49 }
 0x2a6   :  { %v2955_v58 = vpop.eup %2954  ;;  %2162 = vst.msk [vmem:[%s4005_s7 + $0x178] sm:$0xff] %vm2114_vm2, %v2953_v57  ;;  %2980 = vrcp.f32 %v1975_v54  ;;  %v2377_v59 = vmul.f32 -1.442695, %v1729_v56 }
 0x2a7   :  { %v2957_v60 = vpop.eup %2956  ;;  %v1976_v61 = vadd.f32 1.0, %v2955_v58  ;;  %2982 = vpow2.f32 %v2376_v55 }
 0x2a8   :  { %v2959_v62 = vpop.eup %2958  ;;  %v1977_v26 = vadd.f32 1.0, %v2957_v60  ;;  %2984 = vpow2.f32 %v2377_v59 }
 0x2a9   :  { %v2961_v63 = vpop.eup %2960  ;;  %2163 = vst.msk [vmem:[%s4005_s7 + $0x180] sm:$0xff] %vm2114_vm2, %v2959_v62  ;;  %2986 = vrcp.f32 %v1976_v61 }
 0x2aa   :  { %v2963_v0 = vpop.eup %2962  ;;  %2164 = vst.msk [vmem:[%s4005_s7 + $0x188] sm:$0xff] %vm2114_vm2, %v2961_v63  ;;  %2988 = vrcp.f32 %v1977_v26 }
 0x2ab   :  { %v2965_v1 = vpop.eup %2964  ;;  %v1978_v2 = vadd.f32 1.0, %v2963_v0 }
 0x2ac   :  { %v2967_v3 = vpop.eup %2966  ;;  %v1979_v4 = vadd.f32 1.0, %v2965_v1 }
 0x2ad   :  { %v2969_v5 = vpop.eup %2968  ;;  %2990 = vrcp.f32 %v1978_v2  ;;  %v1980_v6 = vadd.f32 1.0, %v2967_v3 }
 0x2ae   :  { %v2971_v7 = vpop.eup %2970  ;;  %2165 = vst.msk [vmem:[%s4005_s7 + $0x190] sm:$0xff] %vm2114_vm2, %v2969_v5  ;;  %2992 = vrcp.f32 %v1979_v4 }
 0x2af   :  { %v2973_v8 = vpop.eup %2972  ;;  %2994 = vrcp.f32 %v1980_v6  ;;  %v1981_v9 = vadd.f32 1.0, %v2971_v7 }
 0x2b0   :  { %v2975_v10 = vpop.eup %2974  ;;  %2166 = vst.msk [vmem:[%s4005_s7 + $0x198] sm:$0xff] %vm2114_vm2, %v2973_v8 }
 0x2b1   :  { %v2977_v11 = vpop.eup %2976  ;;  %2996 = vrcp.f32 %v1981_v9  ;;  %v1982_v13 = vadd.f32 1.0, %v2975_v10 }
 0x2b2   :  { %v2979_v14 = vpop.eup %2978  ;;  %2167 = vst.msk [vmem:[%s4005_s7 + $0x1a0] sm:$0xff] %vm2114_vm2, %v2977_v11 }
 0x2b3   :  { %v2981_v15 = vpop.eup %2980  ;;  %2998 = vrcp.f32 %v1982_v13  ;;  %v1983_v17 = vadd.f32 1.0, %v2979_v14 }
 0x2b4   :  { %v2983_v18 = vpop.eup %2982  ;;  %2168 = vst.msk [vmem:[%s4005_s7 + $0x1a8] sm:$0xff] %vm2114_vm2, %v2981_v15 }
 0x2b5   :  { %v2985_v19 = vpop.eup %2984  ;;  %3000 = vrcp.f32 %v1983_v17  ;;  %v1984_v20 = vadd.f32 1.0, %v2983_v18 }
 0x2b6   :  { %v2987_v21 = vpop.eup %2986  ;;  %v1985_v22 = vadd.f32 1.0, %v2985_v19 }
 0x2b7   :  { %v2989_v23 = vpop.eup %2988  ;;  %2169 = vst.msk [vmem:[%s4005_s7 + $0x1b0] sm:$0xff] %vm2114_vm2, %v2987_v21  ;;  %3002 = vrcp.f32 %v1984_v20 }
 0x2b8   :  { %2170 = vst.msk [vmem:[%s4005_s7 + $0x1b8] sm:$0xff] %vm2114_vm2, %v2989_v23  ;;  %3004 = vrcp.f32 %v1985_v22 }
 0x2ba   :  { %v2991_v24 = vpop.eup %2990 }
 0x2bb   :  { %v2993_v25 = vpop.eup %2992  ;;  %2171 = vst.msk [vmem:[%s4005_s7 + $0x1c0] sm:$0xff] %vm2114_vm2, %v2991_v24 }
 0x2bc   :  { %v2995_v16 = vpop.eup %2994  ;;  %2172 = vst.msk [vmem:[%s4005_s7 + $0x1c8] sm:$0xff] %vm2114_vm2, %v2993_v25 }
 0x2bd   :  { %2173 = vst.msk [vmem:[%s4005_s7 + $0x1d0] sm:$0xff] %vm2114_vm2, %v2995_v16 }
 0x2be   :  { %v2997_v27 = vpop.eup %2996 }
 0x2bf   :  { %2174 = vst.msk [vmem:[%s4005_s7 + $0x1d8] sm:$0xff] %vm2114_vm2, %v2997_v27 }
 0x2c0   :  { %v2999_v28 = vpop.eup %2998 }
 0x2c1   :  { %2175 = vst.msk [vmem:[%s4005_s7 + $0x1e0] sm:$0xff] %vm2114_vm2, %v2999_v28 }
 0x2c2   :  { %v3001_v29 = vpop.eup %3000 }
 0x2c3   :  { %2176 = vst.msk [vmem:[%s4005_s7 + $0x1e8] sm:$0xff] %vm2114_vm2, %v3001_v29 }
 0x2c4   :  { %v3003_v30 = vpop.eup %3002 }
 0x2c5   :  { %v3005_v31 = vpop.eup %3004  ;;  %2177 = vst.msk [vmem:[%s4005_s7 + $0x1f0] sm:$0xff] %vm2114_vm2, %v3003_v30 }
 0x2c6   :  { %2178 = vst.msk [vmem:[%s4005_s7 + $0x1f8] sm:$0xff] %vm2114_vm2, %v3005_v31 }

</bundles_post_ra>
